<compile_context>
chip_gen: v7x
topology: tpu7x:2x2x1
jax: 0.10.0
libtpu: 0.0.40
codegen_flags: <defaults>
</compile_context>

<pallas_src>
import functools
import math

import jax
import jax.numpy as jnp
from jax.experimental import pallas as pl
from jax.experimental.pallas import tpu as pltpu


def _mha_kernel(lens_ref,                                   # SMEM (B,) int32
                q_ref, k_ref, v_ref,                        # (B_blk,Qs) (t_blk,B_blk*Ks) (t_blk,B_blk*Vs)
                wq_ref, wkt_ref, sbig_ref, dmask_ref, pks_ref,
                wvbig_ref, rbig_ref, wc_ref,
                out_ref,                                    # (B_blk, out_pad) f32
                weff_ref, lensrow_ref, m_ref, l_ref, acc_ref,
                *, num_heads, d_v, b_blk, t_blk, scale):
    H = num_heads
    hdv = H * d_v
    t_step = pl.program_id(1)
    b0 = pl.program_id(0) * b_blk

    @pl.when(t_step == 0)
    def _init():
        # Fold query projection + scale into a per-batch effective key->score
        # matrix, laid out block-diagonally over the batch block:
        #   weff[b*Ks+s, b*H+h] = sum_d WK[s, h*dk+d] * (q_b WQ * scale)[h*dk+d]
        u = jnp.dot(q_ref[...], wq_ref[...],
                    preferred_element_type=jnp.float32) * scale       # (B_blk, H*dk)
        u_rows = jnp.dot(pks_ref[...], u,
                         preferred_element_type=jnp.float32)          # (B_blk*Ks, H*dk)
        weff_ref[...] = jnp.dot(wkt_ref[...] * u_rows, sbig_ref[...],
                                preferred_element_type=jnp.float32) * dmask_ref[...]

        # Per-lane valid lengths: lane (b*H + h) -> lens[b] (built from SMEM).
        lane = jax.lax.broadcasted_iota(jnp.int32, (1, b_blk * H), 1)
        lens_vec = jnp.zeros((1, b_blk * H), jnp.int32)
        for b in range(b_blk):
            in_b = (lane >= b * H) & (lane < (b + 1) * H)
            lens_vec = jnp.where(in_b, lens_ref[b0 + b], lens_vec)
        lensrow_ref[...] = lens_vec

        m_ref[...] = jnp.full(m_ref.shape, -1e30, jnp.float32)
        l_ref[...] = jnp.zeros_like(l_ref)
        acc_ref[...] = jnp.zeros_like(acc_ref)

    # ---- one (t_blk, B_blk) tile of the online-softmax reduction ----
    kb = k_ref[...]                                        # (t_blk, B_blk*Ks) f32
    vb = v_ref[...].astype(jnp.bfloat16)                   # (t_blk, B_blk*Vs) bf16

    # Scores for all batches and heads at once (lanes = b*H + h).
    e = jnp.dot(kb, weff_ref[...], preferred_element_type=jnp.float32)

    pos = jax.lax.broadcasted_iota(jnp.int32, e.shape, 0) + t_step * t_blk
    e = jnp.where(pos < lensrow_ref[...], e, -1e30)

    # Per-head value projections for all batches (lanes = b*H*dv + h*dv + d).
    vh = jnp.dot(vb, wvbig_ref[...], preferred_element_type=jnp.float32)

    # Online softmax over the T axis, one state row for all (batch, head).
    m_prev = m_ref[...]
    m_new = jnp.maximum(m_prev, jnp.max(e, axis=0, keepdims=True))
    alpha = jnp.exp(m_prev - m_new)                        # (1, B_blk*H)
    p = jnp.exp(e - m_new)                                 # (t_blk, B_blk*H)
    l_ref[...] = alpha * l_ref[...] + jnp.sum(p, axis=0, keepdims=True)

    # Expand per-(batch, head) weights across each head's d_v lanes.
    p_exp = jnp.dot(p, rbig_ref[...], preferred_element_type=jnp.float32)
    alpha_exp = jnp.dot(alpha, rbig_ref[...], preferred_element_type=jnp.float32)
    acc_ref[...] = alpha_exp * acc_ref[...] + jnp.sum(p_exp * vh, axis=0,
                                                      keepdims=True)
    m_ref[...] = m_new

    @pl.when(t_step == pl.num_programs(1) - 1)
    def _finalize():
        l_inv = pl.reciprocal(l_ref[...], approx=True)                 # (1, B_blk*H)
        l_inv_exp = jnp.dot(l_inv, rbig_ref[...],
                            preferred_element_type=jnp.float32)        # (1, B_blk*H*dv)
        ctx = (acc_ref[...] * l_inv_exp).astype(jnp.bfloat16)
        for b in range(b_blk):                                         # B_blk small, once per batch block
            ctx_b = ctx[0:1, b * hdv:(b + 1) * hdv]                    # (1, H*dv)
            out_ref[b:b + 1, :] = jnp.dot(ctx_b, wc_ref[...],
                                          preferred_element_type=jnp.float32)


def multi_headed_attention(query, key, value, mask, params, *, num_heads,
                           d_q, d_k, d_v, out_size, scale, t_blk=None):
    """Forward pass matching MultiHeadedAttention with dot-product heads (dim=0)."""
    B, Qs = query.shape
    T, Bk, Ks = key.shape
    Vs = value.shape[-1]
    H = num_heads
    assert Bk == B
    assert d_q == d_k, "dot-product heads require matching head query/key size"

    # ---- tiling ----
    if t_blk is None:
        t_blk = T if T <= 128 else 128
    # TODO(synk): support ragged T tails (needs masked V rows); for now the
    # sequence block must divide T exactly.
    assert T % t_blk == 0
    # Batch block: full batch unless it splits into lane-aligned chunks of 8
    # (then the "parallel" batch axis can be spread across TensorCores).
    if B % 8 == 0 and (8 * Ks) % 128 == 0 and (8 * Vs) % 128 == 0:
        b_blk = 8
    else:
        b_blk = B
    nb, nt = B // b_blk, T // t_blk

    # ---- inputs: free trailing-dim merges only (no HBM relayout / cast) ----
    k2 = key.reshape(T, B * Ks)
    v2 = value.reshape(T, B * Vs)

    # Valid lengths per batch from the (T, B) mask (length-prefix masks --
    # the module's canonical padding use).
    # TODO(synk): stream a general (T, B) mask per T-block for arbitrary masks.
    if mask is None:
        lens = jnp.full((B,), T, jnp.int32)
    else:
        lens = jnp.sum(mask > 0, axis=0).astype(jnp.int32)

    # ---- weights and tiny constant selector matrices (one-time) ----
    wq = params["WQ"].astype(jnp.float32)                      # (Qs, H*dq)
    wk = params["WK"].astype(jnp.float32)                      # (Ks, H*dk)
    wv = params["WV"].astype(jnp.float32)                      # (Vs, H*dv)
    wc = params["WC"].astype(jnp.float32)                      # (H*dv, out)

    out_pad = ((out_size + 127) // 128) * 128                  # lane-dense output slab
    eye_h = jnp.eye(H, dtype=jnp.float32)
    eye_b = jnp.eye(b_blk, dtype=jnp.float32)
    s_sel = jnp.repeat(eye_h, d_k, axis=0)                     # (H*dk, H) head-sum
    s_big = jnp.tile(s_sel, (1, b_blk))                        # (H*dk, b_blk*H)
    r_sel = jnp.repeat(eye_h, d_v, axis=1)                     # (H, H*dv) head-repeat
    r_big = jnp.kron(eye_b, r_sel)                             # (b_blk*H, b_blk*H*dv)
    d_mask = jnp.kron(eye_b, jnp.ones((Ks, H), jnp.float32))   # block-diag 0/1 mask
    p_ks = jnp.kron(eye_b, jnp.ones((Ks, 1), jnp.float32))     # row-block one-hot
    wk_tiled = jnp.tile(wk, (b_blk, 1))                        # (b_blk*Ks, H*dk)
    wv_big = jnp.kron(eye_b, wv).astype(jnp.bfloat16)          # (b_blk*Vs, b_blk*H*dv)
    wc_pad = jnp.zeros((H * d_v, out_pad), jnp.float32).at[:, :out_size].set(wc)
    wc_pad = wc_pad.astype(jnp.bfloat16)

    kernel = functools.partial(_mha_kernel, num_heads=H, d_v=d_v,
                               b_blk=b_blk, t_blk=t_blk, scale=scale)

    grid_spec = pltpu.PrefetchScalarGridSpec(
        num_scalar_prefetch=1,
        grid=(nb, nt),
        in_specs=[
            pl.BlockSpec((b_blk, Qs), lambda b, t, l: (b, 0)),                    # query
            pl.BlockSpec((t_blk, b_blk * Ks), lambda b, t, l: (t, b)),            # key  (T, B*Ks)
            pl.BlockSpec((t_blk, b_blk * Vs), lambda b, t, l: (t, b)),            # value(T, B*Vs)
            pl.BlockSpec((Qs, H * d_q), lambda b, t, l: (0, 0)),                  # WQ
            pl.BlockSpec((b_blk * Ks, H * d_k), lambda b, t, l: (0, 0)),          # WK tiled
            pl.BlockSpec((H * d_k, b_blk * H), lambda b, t, l: (0, 0)),           # head-sum sel
            pl.BlockSpec((b_blk * Ks, b_blk * H), lambda b, t, l: (0, 0)),        # block-diag mask
            pl.BlockSpec((b_blk * Ks, b_blk), lambda b, t, l: (0, 0)),            # row-block one-hot
            pl.BlockSpec((b_blk * Vs, b_blk * H * d_v), lambda b, t, l: (0, 0)),  # WV block-diag
            pl.BlockSpec((b_blk * H, b_blk * H * d_v), lambda b, t, l: (0, 0)),   # head-repeat sel
            pl.BlockSpec((H * d_v, out_pad), lambda b, t, l: (0, 0)),             # WC (padded)
        ],
        out_specs=pl.BlockSpec((b_blk, out_pad), lambda b, t, l: (b, 0)),
        scratch_shapes=[
            pltpu.VMEM((b_blk * Ks, b_blk * H), jnp.float32),   # effective key->score matrix
            pltpu.VMEM((1, b_blk * H), jnp.int32),              # per-lane lengths
            pltpu.VMEM((1, b_blk * H), jnp.float32),            # running max
            pltpu.VMEM((1, b_blk * H), jnp.float32),            # running denom
            pltpu.VMEM((1, b_blk * H * d_v), jnp.float32),      # running context
        ],
    )

    flops = (2 * T * B * Ks * H + 2 * T * B * Vs * H * d_v + 4 * T * B * H * d_v
             + 2 * B * Qs * H * d_q + 2 * B * Ks * H * d_k
             + 2 * B * H * d_v * out_pad)
    operands = (query, k2, v2, wq, wk_tiled, s_big, d_mask, p_ks, wv_big,
                r_big, wc_pad)
    bytes_accessed = (sum(int(a.size) * a.dtype.itemsize for a in operands)
                      + int(lens.size) * 4 + B * out_pad * 4)

    out = pl.pallas_call(
        kernel,
        out_shape=jax.ShapeDtypeStruct((B, out_pad), jnp.float32),
        grid_spec=grid_spec,
        compiler_params=pltpu.CompilerParams(
            dimension_semantics=("parallel", "arbitrary"),
            vmem_limit_bytes=32 * 1024 * 1024),
        cost_estimate=pl.CostEstimate(flops=flops,
                                      transcendentals=2 * T * B * H,
                                      bytes_accessed=bytes_accessed),
    )(lens, query, k2, v2, wq, wk_tiled, s_big, d_mask, p_ks, wv_big,
      r_big, wc_pad)

    return out[:, :out_size]


def reference(query, key, value, mask, params, *, num_heads, d_q, d_k, d_v,
              out_size, scale):
    """Pure-JAX f32 mirror of the PyTorch forward (dim=0 dot-product heads)."""
    B = query.shape[0]
    T = key.shape[0]
    qh = (query @ params["WQ"]).reshape(B, num_heads, d_q)
    kh = (key @ params["WK"]).reshape(T, B, num_heads, d_k)
    vh = (value @ params["WV"]).reshape(T, B, num_heads, d_v)
    e = jnp.einsum("bhd,tbhd->tbh", qh, kh) * scale
    e = jnp.where(mask[:, :, None] == 0, -jnp.inf, e)
    a = jax.nn.softmax(e, axis=0)
    cat = jnp.einsum("tbh,tbhd->bhd", a, vh).reshape(B, num_heads * d_v)
    return cat @ params["WC"]


def _init_linear(key, fan_in, fan_out):
    # Deterministic torch.nn.Linear-style init, stored as (in, out).
    bound = 1.0 / math.sqrt(fan_in)
    return jax.random.uniform(key, (fan_in, fan_out), jnp.float32,
                              minval=-bound, maxval=bound)


if __name__ == "__main__":
    # Small, module-consistent shapes (T=32 so the flash T-loop takes 2 steps).
    T, B = 32, 4
    query_size = key_size = value_size = 32
    num_heads = 4
    d_q = d_k = 8                          # single_head_attention sizes
    d_v = max(1, value_size // num_heads)  # = 8
    out_size = value_size                  # default: out_size == value_size
    scale = 1.0 / math.sqrt(d_k)

    root = jax.random.PRNGKey(0)
    kq, kk, kv, kwq, kwk, kwv, kwc, klen = jax.random.split(root, 8)

    query = jax.random.normal(kq, (B, query_size), jnp.float32)
    key = jax.random.normal(kk, (T, B, key_size), jnp.float32)
    value = jax.random.normal(kv, (T, B, value_size), jnp.float32)

    lens = jax.random.randint(klen, (B,), 1, T + 1)
    # mask: (T, B), 1 where t < len_b (PyTorch dim=0 convention)
    mask = (jnp.arange(T)[:, None] < lens[None, :]).astype(jnp.float32)

    params = {
        "WQ": _init_linear(kwq, query_size, num_heads * d_q),
        "WK": _init_linear(kwk, key_size, num_heads * d_k),
        "WV": _init_linear(kwv, value_size, num_heads * d_v),
        "WC": _init_linear(kwc, num_heads * d_v, out_size),
    }

    kwargs = dict(num_heads=num_heads, d_q=d_q, d_k=d_k, d_v=d_v,
                  out_size=out_size, scale=scale)

    out = multi_headed_attention(query, key, value, mask, params,
                                 t_blk=16, **kwargs)
    out = jax.block_until_ready(out)

    ref = reference(query, key, value, mask, params, **kwargs)
    assert out.shape == (B, out_size)
    max_err = jnp.max(jnp.abs(out - ref))
    # bf16 value/output projections (f32 accumulate) + approx reciprocal.
    assert jnp.allclose(out, ref, rtol=2e-2, atol=2e-2), f"max err {max_err}"

    print("KERNEL_OK")
</pallas_src>

<mosaic_0001>
module attributes {stable_mosaic.version = 11 : i64} {
  func.func @_mha_kernel(%arg0: i32, %arg1: i32, %arg2: memref<4xi32, #tpu.memory_space<smem>>, %arg3: memref<4x32xf32, #tpu.memory_space<vmem>>, %arg4: memref<16x128xf32, #tpu.memory_space<vmem>>, %arg5: memref<16x128xf32, #tpu.memory_space<vmem>>, %arg6: memref<32x32xf32, #tpu.memory_space<vmem>>, %arg7: memref<128x32xf32, #tpu.memory_space<vmem>>, %arg8: memref<32x16xf32, #tpu.memory_space<vmem>>, %arg9: memref<128x16xf32, #tpu.memory_space<vmem>>, %arg10: memref<128x4xf32, #tpu.memory_space<vmem>>, %arg11: memref<128x128xbf16, #tpu.memory_space<vmem>>, %arg12: memref<16x128xf32, #tpu.memory_space<vmem>>, %arg13: memref<32x128xbf16, #tpu.memory_space<vmem>>, %arg14: memref<4x128xf32, #tpu.memory_space<vmem>>, %arg15: memref<128x16xf32, #tpu.memory_space<vmem>>, %arg16: memref<1x16xi32, #tpu.memory_space<vmem>>, %arg17: memref<1x16xf32, #tpu.memory_space<vmem>>, %arg18: memref<1x16xf32, #tpu.memory_space<vmem>>, %arg19: memref<1x128xf32, #tpu.memory_space<vmem>>) attributes {dimension_semantics = [#tpu.dimension_semantics<parallel>, #tpu.dimension_semantics<arbitrary>], iteration_bounds = array<i64: 1, 2>, scalar_prefetch = 1 : i64, scratch_operands = 5 : i64, tpu.core_type = #tpu.core_type<tc>, window_params = [{transform_indices = @transform_0, window_bounds = array<i64: 4, 32>}, {transform_indices = @transform_1, window_bounds = array<i64: 16, 128>}, {transform_indices = @transform_2, window_bounds = array<i64: 16, 128>}, {pipeline_mode = #tpu.pipeline_mode<synchronous>, transform_indices = @transform_3, window_bounds = array<i64: 32, 32>}, {pipeline_mode = #tpu.pipeline_mode<synchronous>, transform_indices = @transform_4, window_bounds = array<i64: 128, 32>}, {pipeline_mode = #tpu.pipeline_mode<synchronous>, transform_indices = @transform_5, window_bounds = array<i64: 32, 16>}, {pipeline_mode = #tpu.pipeline_mode<synchronous>, transform_indices = @transform_6, window_bounds = array<i64: 128, 16>}, {pipeline_mode = #tpu.pipeline_mode<synchronous>, transform_indices = @transform_7, window_bounds = array<i64: 128, 4>}, {pipeline_mode = #tpu.pipeline_mode<synchronous>, transform_indices = @transform_8, window_bounds = array<i64: 128, 128>}, {pipeline_mode = #tpu.pipeline_mode<synchronous>, transform_indices = @transform_9, window_bounds = array<i64: 16, 128>}, {pipeline_mode = #tpu.pipeline_mode<synchronous>, transform_indices = @transform_10, window_bounds = array<i64: 32, 128>}, {transform_indices = @transform_11, window_bounds = array<i64: 4, 128>}]} {
    %c4_i32 = arith.constant 4 : i32
    %0 = arith.muli %arg0, %c4_i32 : i32
    %c0_i32 = arith.constant 0 : i32
    %1 = arith.cmpi eq, %arg1, %c0_i32 : i32
    %2 = arith.extui %1 : i1 to i32
    %c0_i32_0 = arith.constant 0 : i32
    %3 = arith.cmpi ne, %2, %c0_i32_0 : i32
    scf.if %3 {
      %c0_34 = arith.constant 0 : index
      %c0_35 = arith.constant 0 : index
      %50 = vector.load %arg3[%c0_34, %c0_35] : memref<4x32xf32, #tpu.memory_space<vmem>>, vector<4x32xf32>
      %c0_36 = arith.constant 0 : index
      %c0_37 = arith.constant 0 : index
      %51 = vector.load %arg6[%c0_36, %c0_37] : memref<32x32xf32, #tpu.memory_space<vmem>>, vector<32x32xf32>
      %cst_38 = arith.constant dense<0.000000e+00> : vector<4x32xf32>
      %52 = tpu.matmul %50, %51, %cst_38 {dimension_numbers = #tpu.dot_dimension_numbers<[1], [0], [0], [1], [0, 0, 1, 1], [], []>} : vector<4x32xf32>, vector<32x32xf32>, vector<4x32xf32> -> vector<4x32xf32>
      %cst_39 = arith.constant 0.353553385 : f32
      %53 = vector.broadcast %cst_39 : f32 to vector<4x32xf32>
      %54 = arith.mulf %52, %53 : vector<4x32xf32>
      %c0_40 = arith.constant 0 : index
      %c0_41 = arith.constant 0 : index
      %55 = vector.load %arg10[%c0_40, %c0_41] : memref<128x4xf32, #tpu.memory_space<vmem>>, vector<128x4xf32>
      %cst_42 = arith.constant dense<0.000000e+00> : vector<128x32xf32>
      %56 = tpu.matmul %55, %54, %cst_42 {dimension_numbers = #tpu.dot_dimension_numbers<[1], [0], [0], [1], [0, 0, 1, 1], [], []>} : vector<128x4xf32>, vector<4x32xf32>, vector<128x32xf32> -> vector<128x32xf32>
      %c0_43 = arith.constant 0 : index
      %c0_44 = arith.constant 0 : index
      %57 = vector.load %arg7[%c0_43, %c0_44] : memref<128x32xf32, #tpu.memory_space<vmem>>, vector<128x32xf32>
      %58 = arith.mulf %57, %56 : vector<128x32xf32>
      %c0_45 = arith.constant 0 : index
      %c0_46 = arith.constant 0 : index
      %59 = vector.load %arg8[%c0_45, %c0_46] : memref<32x16xf32, #tpu.memory_space<vmem>>, vector<32x16xf32>
      %cst_47 = arith.constant dense<0.000000e+00> : vector<128x16xf32>
      %60 = tpu.matmul %58, %59, %cst_47 {dimension_numbers = #tpu.dot_dimension_numbers<[1], [0], [0], [1], [0, 0, 1, 1], [], []>} : vector<128x32xf32>, vector<32x16xf32>, vector<128x16xf32> -> vector<128x16xf32>
      %c0_48 = arith.constant 0 : index
      %c0_49 = arith.constant 0 : index
      %61 = vector.load %arg9[%c0_48, %c0_49] : memref<128x16xf32, #tpu.memory_space<vmem>>, vector<128x16xf32>
      %62 = arith.mulf %60, %61 : vector<128x16xf32>
      %c0_50 = arith.constant 0 : index
      %c0_51 = arith.constant 0 : index
      %63 = vector.load %arg15[%c0_50, %c0_51] : memref<128x16xf32, #tpu.memory_space<vmem>>, vector<128x16xf32>
      tpu.vector_store %arg15[%c0_50, %c0_51], %62 {strides = array<i32>} : memref<128x16xf32, #tpu.memory_space<vmem>>, vector<128x16xf32>,
      %64 = tpu.iota {dimensions = array<i32: 1>} : vector<1x16xi32>
      %c0_i32_52 = arith.constant 0 : i32
      %65 = vector.broadcast %c0_i32_52 : i32 to vector<1x16xi32>
      %c0_i32_53 = arith.constant 0 : i32
      %66 = vector.broadcast %c0_i32_53 : i32 to vector<1x16xi32>
      %67 = arith.cmpi sge, %64, %66 : vector<1x16xi32>
      %c4_i32_54 = arith.constant 4 : i32
      %68 = vector.broadcast %c4_i32_54 : i32 to vector<1x16xi32>
      %69 = arith.cmpi slt, %64, %68 : vector<1x16xi32>
      %70 = arith.andi %67, %69 : vector<1x16xi1>
      %c0_i32_55 = arith.constant 0 : i32
      %71 = arith.addi %0, %c0_i32_55 : i32
      %72 = arith.index_cast %71 : i32 to index
      %73 = memref.load %arg2[%72] : memref<4xi32, #tpu.memory_space<smem>>
      %74 = vector.broadcast %73 : i32 to vector<1x16xi32>
      %75 = arith.select %70, %74, %65 : vector<1x16xi1>, vector<1x16xi32>
      %c4_i32_56 = arith.constant 4 : i32
      %76 = vector.broadcast %c4_i32_56 : i32 to vector<1x16xi32>
      %77 = arith.cmpi sge, %64, %76 : vector<1x16xi32>
      %c8_i32 = arith.constant 8 : i32
      %78 = vector.broadcast %c8_i32 : i32 to vector<1x16xi32>
      %79 = arith.cmpi slt, %64, %78 : vector<1x16xi32>
      %80 = arith.andi %77, %79 : vector<1x16xi1>
      %c1_i32_57 = arith.constant 1 : i32
      %81 = arith.addi %0, %c1_i32_57 : i32
      %82 = arith.index_cast %81 : i32 to index
      %83 = memref.load %arg2[%82] : memref<4xi32, #tpu.memory_space<smem>>
      %84 = vector.broadcast %83 : i32 to vector<1x16xi32>
      %85 = arith.select %80, %84, %75 : vector<1x16xi1>, vector<1x16xi32>
      %c8_i32_58 = arith.constant 8 : i32
      %86 = vector.broadcast %c8_i32_58 : i32 to vector<1x16xi32>
      %87 = arith.cmpi sge, %64, %86 : vector<1x16xi32>
      %c12_i32 = arith.constant 12 : i32
      %88 = vector.broadcast %c12_i32 : i32 to vector<1x16xi32>
      %89 = arith.cmpi slt, %64, %88 : vector<1x16xi32>
      %90 = arith.andi %87, %89 : vector<1x16xi1>
      %c2_i32 = arith.constant 2 : i32
      %91 = arith.addi %0, %c2_i32 : i32
      %92 = arith.index_cast %91 : i32 to index
      %93 = memref.load %arg2[%92] : memref<4xi32, #tpu.memory_space<smem>>
      %94 = vector.broadcast %93 : i32 to vector<1x16xi32>
      %95 = arith.select %90, %94, %85 : vector<1x16xi1>, vector<1x16xi32>
      %c12_i32_59 = arith.constant 12 : i32
      %96 = vector.broadcast %c12_i32_59 : i32 to vector<1x16xi32>
      %97 = arith.cmpi sge, %64, %96 : vector<1x16xi32>
      %c16_i32_60 = arith.constant 16 : i32
      %98 = vector.broadcast %c16_i32_60 : i32 to vector<1x16xi32>
      %99 = arith.cmpi slt, %64, %98 : vector<1x16xi32>
      %100 = arith.andi %97, %99 : vector<1x16xi1>
      %c3_i32 = arith.constant 3 : i32
      %101 = arith.addi %0, %c3_i32 : i32
      %102 = arith.index_cast %101 : i32 to index
      %103 = memref.load %arg2[%102] : memref<4xi32, #tpu.memory_space<smem>>
      %104 = vector.broadcast %103 : i32 to vector<1x16xi32>
      %105 = arith.select %100, %104, %95 : vector<1x16xi1>, vector<1x16xi32>
      %c0_61 = arith.constant 0 : index
      %c0_62 = arith.constant 0 : index
      %106 = vector.load %arg16[%c0_61, %c0_62] : memref<1x16xi32, #tpu.memory_space<vmem>>, vector<1x16xi32>
      tpu.vector_store %arg16[%c0_61, %c0_62], %105 {strides = array<i32>} : memref<1x16xi32, #tpu.memory_space<vmem>>, vector<1x16xi32>,
      %cst_63 = arith.constant -1.000000e+30 : f32
      %107 = vector.broadcast %cst_63 : f32 to vector<1x16xf32>
      %c0_64 = arith.constant 0 : index
      %c0_65 = arith.constant 0 : index
      %108 = vector.load %arg17[%c0_64, %c0_65] : memref<1x16xf32, #tpu.memory_space<vmem>>, vector<1x16xf32>
      tpu.vector_store %arg17[%c0_64, %c0_65], %107 {strides = array<i32>} : memref<1x16xf32, #tpu.memory_space<vmem>>, vector<1x16xf32>,
      %cst_66 = arith.constant 0.000000e+00 : f32
      %109 = vector.broadcast %cst_66 : f32 to vector<1x16xf32>
      %c0_67 = arith.constant 0 : index
      %c0_68 = arith.constant 0 : index
      %110 = vector.load %arg18[%c0_67, %c0_68] : memref<1x16xf32, #tpu.memory_space<vmem>>, vector<1x16xf32>
      tpu.vector_store %arg18[%c0_67, %c0_68], %109 {strides = array<i32>} : memref<1x16xf32, #tpu.memory_space<vmem>>, vector<1x16xf32>,
      %cst_69 = arith.constant 0.000000e+00 : f32
      %111 = vector.broadcast %cst_69 : f32 to vector<1x128xf32>
      %c0_70 = arith.constant 0 : index
      %c0_71 = arith.constant 0 : index
      %112 = vector.load %arg19[%c0_70, %c0_71] : memref<1x128xf32, #tpu.memory_space<vmem>>, vector<1x128xf32>
      tpu.vector_store %arg19[%c0_70, %c0_71], %111 {strides = array<i32>} : memref<1x128xf32, #tpu.memory_space<vmem>>, vector<1x128xf32>,
    } else {
    }
    %c0 = arith.constant 0 : index
    %c0_1 = arith.constant 0 : index
    %4 = vector.load %arg4[%c0, %c0_1] : memref<16x128xf32, #tpu.memory_space<vmem>>, vector<16x128xf32>
    %c0_2 = arith.constant 0 : index
    %c0_3 = arith.constant 0 : index
    %5 = vector.load %arg5[%c0_2, %c0_3] : memref<16x128xf32, #tpu.memory_space<vmem>>, vector<16x128xf32>
    %6 = arith.truncf %5 : vector<16x128xf32> to vector<16x128xbf16>
    %c0_4 = arith.constant 0 : index
    %c0_5 = arith.constant 0 : index
    %7 = vector.load %arg15[%c0_4, %c0_5] : memref<128x16xf32, #tpu.memory_space<vmem>>, vector<128x16xf32>
    %cst = arith.constant dense<0.000000e+00> : vector<16x16xf32>
    %8 = tpu.matmul %4, %7, %cst {dimension_numbers = #tpu.dot_dimension_numbers<[1], [0], [0], [1], [0, 0, 1, 1], [], []>} : vector<16x128xf32>, vector<128x16xf32>, vector<16x16xf32> -> vector<16x16xf32>
    %9 = tpu.iota {dimensions = array<i32: 0>} : vector<16x16xi32>
    %c16_i32 = arith.constant 16 : i32
    %10 = arith.muli %arg1, %c16_i32 : i32
    %11 = vector.broadcast %10 : i32 to vector<16x16xi32>
    %12 = arith.addi %9, %11 : vector<16x16xi32>
    %c0_6 = arith.constant 0 : index
    %c0_7 = arith.constant 0 : index
    %13 = vector.load %arg16[%c0_6, %c0_7] : memref<1x16xi32, #tpu.memory_space<vmem>>, vector<1x16xi32>
    %14 = vector.broadcast %13 : vector<1x16xi32> to vector<16x16xi32>
    %15 = arith.cmpi slt, %12, %14 : vector<16x16xi32>
    %cst_8 = arith.constant -1.000000e+30 : f32
    %16 = vector.broadcast %cst_8 : f32 to vector<16x16xf32>
    %17 = arith.select %15, %8, %16 : vector<16x16xi1>, vector<16x16xf32>
    %c0_9 = arith.constant 0 : index
    %c0_10 = arith.constant 0 : index
    %18 = vector.load %arg11[%c0_9, %c0_10] : memref<128x128xbf16, #tpu.memory_space<vmem>>, vector<128x128xbf16>
    %cst_11 = arith.constant dense<0.000000e+00> : vector<16x128xf32>
    %19 = tpu.matmul %6, %18, %cst_11 {dimension_numbers = #tpu.dot_dimension_numbers<[1], [0], [0], [1], [0, 0, 1, 1], [], []>} : vector<16x128xbf16>, vector<128x128xbf16>, vector<16x128xf32> -> vector<16x128xf32>
    %c0_12 = arith.constant 0 : index
    %c0_13 = arith.constant 0 : index
    %20 = vector.load %arg17[%c0_12, %c0_13] : memref<1x16xf32, #tpu.memory_space<vmem>>, vector<1x16xf32>
    %cst_14 = arith.constant dense<0xFF800000> : vector<16xf32>
    %21 = vector.multi_reduction <maximumf>, %17, %cst_14 [0] : vector<16x16xf32> to vector<16xf32>
    %22 = vector.shape_cast %21 : vector<16xf32> to vector<1x16xf32>
    %23 = arith.maximumf %20, %22 : vector<1x16xf32>
    %24 = arith.subf %20, %23 : vector<1x16xf32>
    %25 = math.exp %24 : vector<1x16xf32>
    %26 = vector.broadcast %23 : vector<1x16xf32> to vector<16x16xf32>
    %27 = arith.subf %17, %26 : vector<16x16xf32>
    %28 = math.exp %27 : vector<16x16xf32>
    %c0_15 = arith.constant 0 : index
    %c0_16 = arith.constant 0 : index
    %29 = vector.load %arg18[%c0_15, %c0_16] : memref<1x16xf32, #tpu.memory_space<vmem>>, vector<1x16xf32>
    %30 = arith.mulf %25, %29 : vector<1x16xf32>
    %cst_17 = arith.constant dense<0.000000e+00> : vector<16xf32>
    %31 = vector.multi_reduction <add>, %28, %cst_17 [0] : vector<16x16xf32> to vector<16xf32>
    %32 = vector.shape_cast %31 : vector<16xf32> to vector<1x16xf32>
    %33 = arith.addf %30, %32 : vector<1x16xf32>
    %c0_18 = arith.constant 0 : index
    %c0_19 = arith.constant 0 : index
    %34 = vector.load %arg18[%c0_18, %c0_19] : memref<1x16xf32, #tpu.memory_space<vmem>>, vector<1x16xf32>
    tpu.vector_store %arg18[%c0_18, %c0_19], %33 {strides = array<i32>} : memref<1x16xf32, #tpu.memory_space<vmem>>, vector<1x16xf32>,
    %c0_20 = arith.constant 0 : index
    %c0_21 = arith.constant 0 : index
    %35 = vector.load %arg12[%c0_20, %c0_21] : memref<16x128xf32, #tpu.memory_space<vmem>>, vector<16x128xf32>
    %cst_22 = arith.constant dense<0.000000e+00> : vector<16x128xf32>
    %36 = tpu.matmul %28, %35, %cst_22 {dimension_numbers = #tpu.dot_dimension_numbers<[1], [0], [0], [1], [0, 0, 1, 1], [], []>} : vector<16x16xf32>, vector<16x128xf32>, vector<16x128xf32> -> vector<16x128xf32>
    %c0_23 = arith.constant 0 : index
    %c0_24 = arith.constant 0 : index
    %37 = vector.load %arg12[%c0_23, %c0_24] : memref<16x128xf32, #tpu.memory_space<vmem>>, vector<16x128xf32>
    %cst_25 = arith.constant dense<0.000000e+00> : vector<1x128xf32>
    %38 = tpu.matmul %25, %37, %cst_25 {dimension_numbers = #tpu.dot_dimension_numbers<[1], [0], [0], [1], [0, 0, 1, 1], [], []>} : vector<1x16xf32>, vector<16x128xf32>, vector<1x128xf32> -> vector<1x128xf32>
    %c0_26 = arith.constant 0 : index
    %c0_27 = arith.constant 0 : index
    %39 = vector.load %arg19[%c0_26, %c0_27] : memref<1x128xf32, #tpu.memory_space<vmem>>, vector<1x128xf32>
    %40 = arith.mulf %38, %39 : vector<1x128xf32>
    %41 = arith.mulf %36, %19 : vector<16x128xf32>
    %cst_28 = arith.constant dense<0.000000e+00> : vector<128xf32>
    %42 = vector.multi_reduction <add>, %41, %cst_28 [0] : vector<16x128xf32> to vector<128xf32>
    %43 = vector.shape_cast %42 : vector<128xf32> to vector<1x128xf32>
    %44 = arith.addf %40, %43 : vector<1x128xf32>
    %c0_29 = arith.constant 0 : index
    %c0_30 = arith.constant 0 : index
    %45 = vector.load %arg19[%c0_29, %c0_30] : memref<1x128xf32, #tpu.memory_space<vmem>>, vector<1x128xf32>
    tpu.vector_store %arg19[%c0_29, %c0_30], %44 {strides = array<i32>} : memref<1x128xf32, #tpu.memory_space<vmem>>, vector<1x128xf32>,
    %c0_31 = arith.constant 0 : index
    %c0_32 = arith.constant 0 : index
    %46 = vector.load %arg17[%c0_31, %c0_32] : memref<1x16xf32, #tpu.memory_space<vmem>>, vector<1x16xf32>
    tpu.vector_store %arg17[%c0_31, %c0_32], %23 {strides = array<i32>} : memref<1x16xf32, #tpu.memory_space<vmem>>, vector<1x16xf32>,
    %c1_i32 = arith.constant 1 : i32
    %47 = arith.cmpi eq, %arg1, %c1_i32 : i32
    %48 = arith.extui %47 : i1 to i32
    %c0_i32_33 = arith.constant 0 : i32
    %49 = arith.cmpi ne, %48, %c0_i32_33 : i32
    scf.if %49 {
      %c0_34 = arith.constant 0 : index
      %c0_35 = arith.constant 0 : index
      %50 = vector.load %arg18[%c0_34, %c0_35] : memref<1x16xf32, #tpu.memory_space<vmem>>, vector<1x16xf32>
      %51 = tpu.reciprocal %50 {approx = true} : vector<1x16xf32> -> vector<1x16xf32>
      %c0_36 = arith.constant 0 : index
      %c0_37 = arith.constant 0 : index
      %52 = vector.load %arg12[%c0_36, %c0_37] : memref<16x128xf32, #tpu.memory_space<vmem>>, vector<16x128xf32>
      %cst_38 = arith.constant dense<0.000000e+00> : vector<1x128xf32>
      %53 = tpu.matmul %51, %52, %cst_38 {dimension_numbers = #tpu.dot_dimension_numbers<[1], [0], [0], [1], [0, 0, 1, 1], [], []>} : vector<1x16xf32>, vector<16x128xf32>, vector<1x128xf32> -> vector<1x128xf32>
      %c0_39 = arith.constant 0 : index
      %c0_40 = arith.constant 0 : index
      %54 = vector.load %arg19[%c0_39, %c0_40] : memref<1x128xf32, #tpu.memory_space<vmem>>, vector<1x128xf32>
      %55 = arith.mulf %54, %53 : vector<1x128xf32>
      %56 = arith.truncf %55 : vector<1x128xf32> to vector<1x128xbf16>
      %57 = vector.extract_strided_slice %56 {offsets = [0, 0], sizes = [1, 32], strides = [1, 1]} : vector<1x128xbf16> to vector<1x32xbf16>
      %c0_41 = arith.constant 0 : index
      %c0_42 = arith.constant 0 : index
      %58 = vector.load %arg13[%c0_41, %c0_42] : memref<32x128xbf16, #tpu.memory_space<vmem>>, vector<32x128xbf16>
      %cst_43 = arith.constant dense<0.000000e+00> : vector<1x128xf32>
      %59 = tpu.matmul %57, %58, %cst_43 {dimension_numbers = #tpu.dot_dimension_numbers<[1], [0], [0], [1], [0, 0, 1, 1], [], []>} : vector<1x32xbf16>, vector<32x128xbf16>, vector<1x128xf32> -> vector<1x128xf32>
      %c0_44 = arith.constant 0 : index
      %c0_45 = arith.constant 0 : index
      %60 = vector.load %arg14[%c0_44, %c0_45] : memref<4x128xf32, #tpu.memory_space<vmem>>, vector<1x128xf32>
      tpu.vector_store %arg14[%c0_44, %c0_45], %59 {strides = array<i32>} : memref<4x128xf32, #tpu.memory_space<vmem>>, vector<1x128xf32>,
      %61 = vector.extract_strided_slice %56 {offsets = [0, 32], sizes = [1, 32], strides = [1, 1]} : vector<1x128xbf16> to vector<1x32xbf16>
      %c0_46 = arith.constant 0 : index
      %c0_47 = arith.constant 0 : index
      %62 = vector.load %arg13[%c0_46, %c0_47] : memref<32x128xbf16, #tpu.memory_space<vmem>>, vector<32x128xbf16>
      %cst_48 = arith.constant dense<0.000000e+00> : vector<1x128xf32>
      %63 = tpu.matmul %61, %62, %cst_48 {dimension_numbers = #tpu.dot_dimension_numbers<[1], [0], [0], [1], [0, 0, 1, 1], [], []>} : vector<1x32xbf16>, vector<32x128xbf16>, vector<1x128xf32> -> vector<1x128xf32>
      %c1 = arith.constant 1 : index
      %c0_49 = arith.constant 0 : index
      %64 = vector.load %arg14[%c1, %c0_49] : memref<4x128xf32, #tpu.memory_space<vmem>>, vector<1x128xf32>
      tpu.vector_store %arg14[%c1, %c0_49], %63 {strides = array<i32>} : memref<4x128xf32, #tpu.memory_space<vmem>>, vector<1x128xf32>,
      %65 = vector.extract_strided_slice %56 {offsets = [0, 64], sizes = [1, 32], strides = [1, 1]} : vector<1x128xbf16> to vector<1x32xbf16>
      %c0_50 = arith.constant 0 : index
      %c0_51 = arith.constant 0 : index
      %66 = vector.load %arg13[%c0_50, %c0_51] : memref<32x128xbf16, #tpu.memory_space<vmem>>, vector<32x128xbf16>
      %cst_52 = arith.constant dense<0.000000e+00> : vector<1x128xf32>
      %67 = tpu.matmul %65, %66, %cst_52 {dimension_numbers = #tpu.dot_dimension_numbers<[1], [0], [0], [1], [0, 0, 1, 1], [], []>} : vector<1x32xbf16>, vector<32x128xbf16>, vector<1x128xf32> -> vector<1x128xf32>
      %c2 = arith.constant 2 : index
      %c0_53 = arith.constant 0 : index
      %68 = vector.load %arg14[%c2, %c0_53] : memref<4x128xf32, #tpu.memory_space<vmem>>, vector<1x128xf32>
      tpu.vector_store %arg14[%c2, %c0_53], %67 {strides = array<i32>} : memref<4x128xf32, #tpu.memory_space<vmem>>, vector<1x128xf32>,
      %69 = vector.extract_strided_slice %56 {offsets = [0, 96], sizes = [1, 32], strides = [1, 1]} : vector<1x128xbf16> to vector<1x32xbf16>
      %c0_54 = arith.constant 0 : index
      %c0_55 = arith.constant 0 : index
      %70 = vector.load %arg13[%c0_54, %c0_55] : memref<32x128xbf16, #tpu.memory_space<vmem>>, vector<32x128xbf16>
      %cst_56 = arith.constant dense<0.000000e+00> : vector<1x128xf32>
      %71 = tpu.matmul %69, %70, %cst_56 {dimension_numbers = #tpu.dot_dimension_numbers<[1], [0], [0], [1], [0, 0, 1, 1], [], []>} : vector<1x32xbf16>, vector<32x128xbf16>, vector<1x128xf32> -> vector<1x128xf32>
      %c3 = arith.constant 3 : index
      %c0_57 = arith.constant 0 : index
      %72 = vector.load %arg14[%c3, %c0_57] : memref<4x128xf32, #tpu.memory_space<vmem>>, vector<1x128xf32>
      tpu.vector_store %arg14[%c3, %c0_57], %71 {strides = array<i32>} : memref<4x128xf32, #tpu.memory_space<vmem>>, vector<1x128xf32>,
    } else {
    }
    return
  }
  func.func @transform_0(%arg0: i32, %arg1: i32, %arg2: memref<4xi32, #tpu.memory_space<smem>>) -> (i32, i32) {
    %c0_i32 = arith.constant 0 : i32
    %c0_i32_0 = arith.constant 0 : i32
    return %arg0, %c0_i32 : i32, i32
  }
  func.func @transform_1(%arg0: i32, %arg1: i32, %arg2: memref<4xi32, #tpu.memory_space<smem>>) -> (i32, i32) {
    %c0_i32 = arith.constant 0 : i32
    return %arg1, %arg0 : i32, i32
  }
  func.func @transform_2(%arg0: i32, %arg1: i32, %arg2: memref<4xi32, #tpu.memory_space<smem>>) -> (i32, i32) {
    %c0_i32 = arith.constant 0 : i32
    return %arg1, %arg0 : i32, i32
  }
  func.func @transform_3(%arg0: i32, %arg1: i32, %arg2: memref<4xi32, #tpu.memory_space<smem>>) -> (i32, i32) {
    %c0_i32 = arith.constant 0 : i32
    %c0_i32_0 = arith.constant 0 : i32
    %c0_i32_1 = arith.constant 0 : i32
    return %c0_i32, %c0_i32_0 : i32, i32
  }
  func.func @transform_4(%arg0: i32, %arg1: i32, %arg2: memref<4xi32, #tpu.memory_space<smem>>) -> (i32, i32) {
    %c0_i32 = arith.constant 0 : i32
    %c0_i32_0 = arith.constant 0 : i32
    %c0_i32_1 = arith.constant 0 : i32
    return %c0_i32, %c0_i32_0 : i32, i32
  }
  func.func @transform_5(%arg0: i32, %arg1: i32, %arg2: memref<4xi32, #tpu.memory_space<smem>>) -> (i32, i32) {
    %c0_i32 = arith.constant 0 : i32
    %c0_i32_0 = arith.constant 0 : i32
    %c0_i32_1 = arith.constant 0 : i32
    return %c0_i32, %c0_i32_0 : i32, i32
  }
  func.func @transform_6(%arg0: i32, %arg1: i32, %arg2: memref<4xi32, #tpu.memory_space<smem>>) -> (i32, i32) {
    %c0_i32 = arith.constant 0 : i32
    %c0_i32_0 = arith.constant 0 : i32
    %c0_i32_1 = arith.constant 0 : i32
    return %c0_i32, %c0_i32_0 : i32, i32
  }
  func.func @transform_7(%arg0: i32, %arg1: i32, %arg2: memref<4xi32, #tpu.memory_space<smem>>) -> (i32, i32) {
    %c0_i32 = arith.constant 0 : i32
    %c0_i32_0 = arith.constant 0 : i32
    %c0_i32_1 = arith.constant 0 : i32
    return %c0_i32, %c0_i32_0 : i32, i32
  }
  func.func @transform_8(%arg0: i32, %arg1: i32, %arg2: memref<4xi32, #tpu.memory_space<smem>>) -> (i32, i32) {
    %c0_i32 = arith.constant 0 : i32
    %c0_i32_0 = arith.constant 0 : i32
    %c0_i32_1 = arith.constant 0 : i32
    return %c0_i32, %c0_i32_0 : i32, i32
  }
  func.func @transform_9(%arg0: i32, %arg1: i32, %arg2: memref<4xi32, #tpu.memory_space<smem>>) -> (i32, i32) {
    %c0_i32 = arith.constant 0 : i32
    %c0_i32_0 = arith.constant 0 : i32
    %c0_i32_1 = arith.constant 0 : i32
    return %c0_i32, %c0_i32_0 : i32, i32
  }
  func.func @transform_10(%arg0: i32, %arg1: i32, %arg2: memref<4xi32, #tpu.memory_space<smem>>) -> (i32, i32) {
    %c0_i32 = arith.constant 0 : i32
    %c0_i32_0 = arith.constant 0 : i32
    %c0_i32_1 = arith.constant 0 : i32
    return %c0_i32, %c0_i32_0 : i32, i32
  }
  func.func @transform_11(%arg0: i32, %arg1: i32, %arg2: memref<4xi32, #tpu.memory_space<smem>>) -> (i32, i32) {
    %c0_i32 = arith.constant 0 : i32
    %c0_i32_0 = arith.constant 0 : i32
    return %arg0, %c0_i32 : i32, i32
  }
}

</mosaic_0001>

<bundles_post_ra>
// kernel: tpu_custom_call.1
= control target key start
LH: loop header
LB: loop body
LE: loop exit
PB: predicated region body
PF: predicated region fallthrough
CT: control target
= control target key end

     0   :  { %s2939_s0 = inlined_call_operand.vmem [shape: s32[4], index: 0, kind: input, shape index: {}]   ;;  %s2940_s1 = inlined_call_operand.vmem [shape: f32[4,32], index: 1, kind: input, shape index: {}]   ;;  %s2941_s2 = inlined_call_operand.vmem [shape: f32[32,128], index: 2, kind: input, shape index: {}]   ;;  %s2942_s3 = inlined_call_operand.vmem [shape: f32[32,128], index: 3, kind: input, shape index: {}]   ;;  %s2943_s4 = inlined_call_operand.vmem [shape: f32[32,32], index: 4, kind: input, shape index: {}]   ;;  %s2944_s5 = inlined_call_operand.vmem [shape: f32[128,32], index: 5, kind: input, shape index: {}]   ;;  %s2945_s6 = inlined_call_operand.vmem [shape: f32[32,16], index: 6, kind: input, shape index: {}]   ;;  %s2946_s7 = inlined_call_operand.vmem [shape: f32[128,16], index: 7, kind: input, shape index: {}]   ;;  %s2947_s8 = inlined_call_operand.vmem [shape: f32[128,4], index: 8, kind: input, shape index: {}]   ;;  %s2948_s9 = inlined_call_operand.vmem [shape: bf16[128,128], index: 9, kind: input, shape index: {}]   ;;  %s2949_s10 = inlined_call_operand.vmem [shape: f32[16,128], index: 10, kind: input, shape index: {}]   ;;  %s2950_s11 = inlined_call_operand.vmem [shape: bf16[32,128], index: 11, kind: input, shape index: {}]   ;;  %s2951_s12 = inlined_call_operand.hbm [shape: f32[4,128], index: 12, kind: output, shape index: {}]  }
   0x1   :  { %s17_s23 = sshll.u32 %s2939_s0, 4  ;;  %s18_s23 = int_to_ptr.vmem [resolvable:$true] %s17_s23 }
   0x2   :  { %s2395_s24 = scalar_lea.vmem %s18_s23, 16  ;;  %p2400_p1 = scmp.lt.s32.totalorder %s18_s23, %s18_s23 }
   0x3   :  { %p2396_p0 = scmp.ne.s32.totalorder %s18_s23, %s2395_s24  ;;  %p2401_p2 = scmp.lt.s32.totalorder %s2395_s24, %s2395_s24 }
   0x5   :  { %p2402_p3 = por %p2401_p2, %p2400_p1 }
   0x7   :  { %p2403_p4 = pnand %p2402_p3, %p2396_p0 }
   0x9   :  { %2406 = shalt.err (!%p2403_p4)  }
   0xa   :  { %s2463_s25 = smov [#allocation8]  }
   0xb   :  { %20 = dma.vmem_to_smem %s18_s23, 16, %s2463_s25, [#allocation7] }
   0xc   :  { %2445 = dma.done.wait [#allocation7], 16 }
   0xd   :  { %2446 = vsyncadd [#allocation7], 4294967280 }
   0xe   :  { %22 = sfence }
   0xf   :  { %23 = vsyncpa [#allocation10], 0  ;;  %s2546_s26 = smov 0   ;;  %s2548_s27 = smov 0  }
  0x10   :  { %s2550_s28 = smov 0  }
  0x11 LB: > { %s1924_s0 = sadd.s32 4294967295, %s2461_s28   ;;  %s38_s29 = sadd.s32 1, %s2457_s27  ;;  %s2461_s28 = sphi %s2550_s28, %s29_s28   ;;  %s2457_s27 = sphi %s2548_s27, %s2954_s27   ;;  %s2453_s26 = sphi %s2546_s26, %s2953_s26  }
  0x12   : > { %p39_p5 = scmp.ge.s32.totalorder %s38_s29, 2  ;;  %p1928_p6 = scmp.ge.s32.totalorder %s2461_s28, 1 }
  0x13   : > { %p388_p7 = scmp.lt.s32.totalorder %s2461_s28, 3 }
  0x14   : > { %s2956_s29 = smov (%p39_p5, %s38_s29), 0 }
  0x15   : > { %p389_p8 = pnand %p1928_p6, %p388_p7 }
  0x16   : > { %s1929_s30 = sshll.u32 (!%p389_p8), %s2453_s26, 1  ;;  %p1933_p10 = scmp.ne.s32.totalorder (!%p389_p8), %s2453_s26, 0 }
  0x17   : > { %392 = sbr.rel (%p389_p8) target bundleno = 1616 (0x650), region = 64  ;;  %p443_p9 = scmp.lt.s32.totalorder (!%p389_p8), %s1929_s30, 3 }
  0x1e   : > { %s2958_s30 = smov (!%p443_p9, %s1929_s30), 3  ;;  %465 = sbr.rel (%p1933_p10) target bundleno = 717 (0x2cd), region = 68 }
  0x1f   : > { %s1930_s13 = sshll.u32 %s2958_s30, 3  ;;  %v467_v0 = vld [vmem:[%s2943_s4] sm:$0xff] (!%p1933_p10)  ;;  %v468_v1 = vld [vmem:[%s2943_s4 + $0x8] sm:$0xff] (!%p1933_p10)  ;;  %v469_v2 = vld [vmem:[%s2943_s4 + $0x10] sm:$0xff] (!%p1933_p10)  ;;  %v1038_v3 = vlaneseq (!%p1933_p10)  ;;  %v2464_v4 = vmov (!%p1933_p10), 0.0|0.0   ;;  %vm2465_vm0 = vmmov (!%p1933_p10), 0  }
  0x20   : > { %s2571_s16 = scalar_lea.vmem %s2941_s2, %s1930_s13  ;;  %s2576_s19 = scalar_lea.vmem %s2942_s3, %s1930_s13  ;;  %2270 = vmatprep.subr.bf16.mxu1 (!%p1933_p10), %v2464_v4  ;;  %v2271_v5 = vpack.c.bf16 (!%p1933_p10), %v468_v1, %v467_v0  ;;  %v470_v6 = vld [vmem:[%s2943_s4 + $0x18] sm:$0xff] (!%p1933_p10)  ;;  %v2466_v7 = vmov (!%p1933_p10), 0.0   ;;  %vm1067_vm1 = vcmask (!%p1933_p10), 122880   ;;  %v2467_v10 = vmov (!%p1933_p10), -1e+30   ;;  %v546_v20 = vld [vmem:[%s2947_s8] sm:$0xff] (!%p1933_p10) }
  0x21   : > { %2101 = vmatprep.mubr.msk.f32.mxu1 (!%p1933_p10), %vm2465_vm0, %v2466_v7  ;;  %s1043_s14 = sld [smem:[#allocation8]] (!%p1933_p10)  ;;  %s2591_s15 = sld [smem:[#allocation8 + $0x1]] (!%p1933_p10)  ;;  %1071 = vst [vmem:[#allocation6] sm:$0x1] (!%p1933_p10), %v2466_v7  ;;  %v1039_v8 = vand.u32 (!%p1933_p10), 127, %v1038_v3  ;;  %v2274_v9 = vpack.c.bf16 (!%p1933_p10), %v470_v6, %v469_v2  ;;  %vm471_vm11 = vcmask (!%p1933_p10), 261120  }
  0x22   : > { %s1969_s17 = sld [smem:[#allocation8 + $0x2]] (!%p1933_p10)  ;;  %s1970_s18 = sld [smem:[#allocation8 + $0x3]] (!%p1933_p10)  ;;  %1070 = vst.msk [vmem:[#allocation5] sm:$0x1] (!%p1933_p10), %vm1067_vm1, %v2466_v7  ;;  %2272 = vmatpush3.bf16.msra.mxu1 (!%p1933_p10), %v2271_v5  ;;  %1069 = vst.msk [vmem:[#allocation4] sm:$0x1] (!%p1933_p10), %vm1067_vm1, %v2467_v10 }
  0x23   : > { %2273 = vmatprep.subr.bf16.mxu1 (!%p1933_p10), %v2464_v4  ;;  %vm1046_vm2 = vcmp.ge.s32.totalorder (!%p1933_p10), %v1039_v8, 4  ;;  %vm1047_vm3 = vcmp.lt.s32.totalorder (!%p1933_p10), %v1039_v8, 8  ;;  %vm1053_vm4 = vcmp.ge.s32.totalorder (!%p1933_p10), %v1039_v8, 8  ;;  %vm1041_vm5 = vcmp.lt.s32.totalorder (!%p1933_p10), %v1039_v8, 4  ;;  %v466_v13 = vld [vmem:[%s2940_s1] sm:$0xf] (!%p1933_p10) }
  0x24   : > { %vm1054_vm6 = vcmp.lt.s32.totalorder (!%p1933_p10), %v1039_v8, 12  ;;  %vm1060_vm7 = vcmp.ge.s32.totalorder (!%p1933_p10), %v1039_v8, 12  ;;  %vm1061_vm8 = vcmp.lt.s32.totalorder (!%p1933_p10), %v1039_v8, 16  ;;  %vm1048_vm9 = vmand (!%p1933_p10), %vm1046_vm2, %vm1047_vm3  ;;  %vm562_vm13 = vcmask (!%p1933_p10), 31744   ;;  %v792_v21 = vld [vmem:[%s2945_s6] sm:$0xff] (!%p1933_p10)  ;;  %v793_v22 = vld [vmem:[%s2945_s6 + $0x8] sm:$0xff] (!%p1933_p10) }
  0x25   : > { %vm1055_vm10 = vmand %vm1053_vm4, %vm1054_vm6  ;;  %v2276_v23 = vpack.c.bf16 %v793_v22, %v792_v21  ;;  %vm611_vm14 = vcmask 1043456   ;;  %v547_v27 = vld [vmem:[%s2947_s8 + $0x8] sm:$0xff]  ;;  %v548_v28 = vld [vmem:[%s2947_s8 + $0x10] sm:$0xff]  ;;  %vm1021_vm15 = vcmask 130048  }
  0x26   : > { %2275 = vmatpush3.bf16.msra.mxu1 %v2274_v9  ;;  %vm1062_vm12 = vmand %vm1060_vm7, %vm1061_vm8  ;;  %v549_v29 = vld [vmem:[%s2947_s8 + $0x18] sm:$0xff]  ;;  %v550_v30 = vld [vmem:[%s2947_s8 + $0x20] sm:$0xff] }
  0x27   : > { %v1044_v11 = vstv %s1043_s14  ;;  %v1051_v12 = vstv %s2591_s15  ;;  %2277 = vmatprep.subr.bf16.mxu0 %v2276_v23  ;;  %v551_v31 = vld [vmem:[%s2947_s8 + $0x28] sm:$0xff]  ;;  %v552_v32 = vld [vmem:[%s2947_s8 + $0x30] sm:$0xff] }
  0x28   : > { %v1045_v14 = vsel %vm1041_vm5, %v1044_v11, 0  ;;  %v1058_v15 = vstv %s1969_s17  ;;  %v1065_v16 = vstv %s1970_s18  ;;  %2279 = vmatpush3.bf16.msra.mxu0 %v2276_v23  ;;  %v553_v33 = vld [vmem:[%s2947_s8 + $0x38] sm:$0xff]  ;;  %v554_v34 = vld [vmem:[%s2947_s8 + $0x40] sm:$0xff] }
  0x29   : > { %v1052_v17 = vsel %vm1048_vm9, %v1051_v12, %v1045_v14  ;;  %2102 = vmatmul.mubr.msk.f32.vlgmr.msra.gmra.mrb[0].mxu1 %vm471_vm11, %v466_v13  ;;  %v555_v35 = vld [vmem:[%s2947_s8 + $0x48] sm:$0xff]  ;;  %v556_v36 = vld [vmem:[%s2947_s8 + $0x50] sm:$0xff]  ;;  %v557_v37 = vld [vmem:[%s2947_s8 + $0x58] sm:$0xff] }
  0x2a   : > { %v1059_v18 = vsel %vm1055_vm10, %v1058_v15, %v1052_v17  ;;  %2106 = vmatprep.mubr.msk.f32.mxu1 %vm562_vm13, %v546_v20  ;;  %v558_v38 = vld [vmem:[%s2947_s8 + $0x60] sm:$0xff]  ;;  %v559_v39 = vld [vmem:[%s2947_s8 + $0x68] sm:$0xff]  ;;  %v560_v40 = vld [vmem:[%s2947_s8 + $0x70] sm:$0xff] }
  0x2b   : > { %v1066_v19 = vsel %vm1062_vm12, %v1065_v16, %v1059_v18  ;;  %v561_v41 = vld [vmem:[%s2947_s8 + $0x78] sm:$0xff]  ;;  %v794_v42 = vld [vmem:[%s2945_s6 + $0x10] sm:$0xff]  ;;  %v760_v45 = vld [vmem:[%s2944_s5] sm:$0xff] }
  0x2c   : > { %1068 = vst.msk [vmem:[#allocation3] sm:$0x1] %vm1067_vm1, %v1066_v19  ;;  %v795_v43 = vld [vmem:[%s2945_s6 + $0x18] sm:$0xff]  ;;  %v761_v47 = vld [vmem:[%s2944_s5 + $0x8] sm:$0xff]  ;;  %v762_v51 = vld [vmem:[%s2944_s5 + $0x10] sm:$0xff] }
  0x2d   : > { %v2280_v44 = vpack.c.bf16 %v795_v43, %v794_v42  ;;  %v763_v53 = vld [vmem:[%s2944_s5 + $0x18] sm:$0xff]  ;;  %v764_v57 = vld [vmem:[%s2944_s5 + $0x20] sm:$0xff]  ;;  %v765_v59 = vld [vmem:[%s2944_s5 + $0x28] sm:$0xff] }
  0x2e   : > { %v766_v63 = vld [vmem:[%s2944_s5 + $0x30] sm:$0xff]  ;;  %v767_v1 = vld [vmem:[%s2944_s5 + $0x38] sm:$0xff]  ;;  %v768_v5 = vld [vmem:[%s2944_s5 + $0x40] sm:$0xff] }
  0x2f   : > { %2281 = vmatprep.subr.bf16.mxu0 %v2280_v44  ;;  %v769_v7 = vld [vmem:[%s2944_s5 + $0x48] sm:$0xff]  ;;  %v770_v11 = vld [vmem:[%s2944_s5 + $0x50] sm:$0xff]  ;;  %v771_v13 = vld [vmem:[%s2944_s5 + $0x58] sm:$0xff] }
  0x30   : > { %2283 = vmatpush3.bf16.msra.mxu0 %v2280_v44  ;;  %v772_v17 = vld [vmem:[%s2944_s5 + $0x60] sm:$0xff]  ;;  %v773_v19 = vld [vmem:[%s2944_s5 + $0x68] sm:$0xff]  ;;  %v774_v23 = vld [vmem:[%s2944_s5 + $0x70] sm:$0xff] }
  0x31   : > { %v993_v42 = vld [vmem:[%s2946_s7 + $0x20] sm:$0xff] }
  0xfc   : > { %v541_v24 = vpop.f32.mrb[0].mxu1 }
  0xfd   : > { %v545_v25 = vmul.f32 0.35355338, %v541_v24  ;;  %v2103_v26 = vpop.f32.mrb[1].mxu1 }
  0xff   : > { %2104 = vmatprep.subr.msk.mxu1 %vm611_vm14, %v545_v25 }
 0x100   : > { %2105 = vmatpush3.msk.msra.mxu1 %vm611_vm14, %v545_v25  ;;  %v775_v25 = vld [vmem:[%s2944_s5 + $0x78] sm:$0xff] }
 0x101   : > { %2107 = vmatmul.mubr.msk.f32.vlgmr.msra.gmra.mrb[2].mxu1 %vm562_vm13, %v547_v27 }
 0x102   : > { %2109 = vmatprep.mubr.msk.f32.mxu1 %vm562_vm13, %v548_v28 }
 0x105   : > { %2110 = vmatmul.mubr.msk.f32.gmra.mrb[4].mxu1 %vm562_vm13, %v549_v29  ;;  %v990_v29 = vld [vmem:[%s2946_s7 + $0x8] sm:$0xff] }
 0x106   : > { %2112 = vmatprep.mubr.msk.f32.mxu1 %vm562_vm13, %v550_v30  ;;  %v989_v30 = vld [vmem:[%s2946_s7] sm:$0xff] }
 0x109   : > { %2113 = vmatmul.mubr.msk.f32.gmra.mrb[6].mxu1 %vm562_vm13, %v551_v31 }
 0x10a   : > { %2115 = vmatprep.mubr.msk.f32.mxu1 %vm562_vm13, %v552_v32 }
 0x10d   : > { %2116 = vmatmul.mubr.msk.f32.gmra.mrb[8].mxu1 %vm562_vm13, %v553_v33 }
 0x10e   : > { %2118 = vmatprep.mubr.msk.f32.mxu1 %vm562_vm13, %v554_v34 }
 0x111   : > { %2119 = vmatmul.mubr.msk.f32.gmra.mrb[10].mxu1 %vm562_vm13, %v555_v35  ;;  %v992_v35 = vld [vmem:[%s2946_s7 + $0x18] sm:$0xff] }
 0x112   : > { %2121 = vmatprep.mubr.msk.f32.mxu1 %vm562_vm13, %v556_v36  ;;  %v991_v36 = vld [vmem:[%s2946_s7 + $0x10] sm:$0xff] }
 0x115   : > { %2122 = vmatmul.mubr.msk.f32.gmra.mrb[12].mxu1 %vm562_vm13, %v557_v37 }
 0x116   : > { %2124 = vmatprep.mubr.msk.f32.mxu1 %vm562_vm13, %v558_v38 }
 0x119   : > { %2125 = vmatmul.mubr.msk.f32.gmra.mrb[14].mxu1 %vm562_vm13, %v559_v39 }
 0x11a   : > { %2127 = vmatprep.mubr.msk.f32.mxu1 %vm562_vm13, %v560_v40 }
 0x11d   : > { %2128 = vmatmul.mubr.msk.f32.gmra.mrb[16].mxu1 %vm562_vm13, %v561_v41  ;;  %v994_v41 = vld [vmem:[%s2946_s7 + $0x28] sm:$0xff] }
 0x1d4   : > { %v2108_v46 = vpop.f32.mrb[2].mxu1 }
 0x1d5   : > { %v681_v48 = vpop.f32.mrb[3].mxu1  ;;  %v777_v50 = vmul.f32 %v2108_v46, %v761_v47  ;;  %v996_v47 = vld [vmem:[%s2946_s7 + $0x38] sm:$0xff] }
 0x1d6   : > { %v776_v49 = vmul.f32 %v760_v45, %v681_v48  ;;  %v995_v48 = vld [vmem:[%s2946_s7 + $0x30] sm:$0xff] }
 0x1d8   : > { %v2111_v52 = vpop.f32.mrb[4].mxu1  ;;  %2138 = vmatprep.mubr.msk.f32.mxu0 %vm471_vm11, %v776_v49 }
 0x1d9   : > { %v691_v54 = vpop.f32.mrb[5].mxu1  ;;  %2139 = vmatmul.mubr.msk.f32.vlgmr.msra.gmra.mrb[0].mxu0 %vm471_vm11, %v777_v50  ;;  %v779_v56 = vmul.f32 %v2111_v52, %v763_v53  ;;  %v998_v53 = vld [vmem:[%s2946_s7 + $0x48] sm:$0xff] }
 0x1da   : > { %v778_v55 = vmul.f32 %v762_v51, %v691_v54  ;;  %v997_v54 = vld [vmem:[%s2946_s7 + $0x40] sm:$0xff] }
 0x1dc   : > { %v2114_v58 = vpop.f32.mrb[6].mxu1  ;;  %2141 = vmatprep.mubr.msk.f32.mxu0 %vm471_vm11, %v778_v55 }
 0x1dd   : > { %v701_v60 = vpop.f32.mrb[7].mxu1  ;;  %2142 = vmatmul.mubr.msk.f32.gmra.mrb[2].mxu0 %vm471_vm11, %v779_v56  ;;  %v781_v62 = vmul.f32 %v2114_v58, %v765_v59  ;;  %v1000_v59 = vld [vmem:[%s2946_s7 + $0x58] sm:$0xff] }
 0x1de   : > { %v780_v61 = vmul.f32 %v764_v57, %v701_v60  ;;  %v999_v60 = vld [vmem:[%s2946_s7 + $0x50] sm:$0xff] }
 0x1e0   : > { %v2117_v0 = vpop.f32.mrb[8].mxu1  ;;  %2144 = vmatprep.mubr.msk.f32.mxu0 %vm471_vm11, %v780_v61 }
 0x1e1   : > { %v711_v2 = vpop.f32.mrb[9].mxu1  ;;  %2145 = vmatmul.mubr.msk.f32.gmra.mrb[4].mxu0 %vm471_vm11, %v781_v62  ;;  %v783_v4 = vmul.f32 %v2117_v0, %v767_v1  ;;  %v1002_v1 = vld [vmem:[%s2946_s7 + $0x68] sm:$0xff] }
 0x1e2   : > { %v782_v3 = vmul.f32 %v766_v63, %v711_v2  ;;  %v1001_v2 = vld [vmem:[%s2946_s7 + $0x60] sm:$0xff] }
 0x1e4   : > { %v2120_v6 = vpop.f32.mrb[10].mxu1  ;;  %2147 = vmatprep.mubr.msk.f32.mxu0 %vm471_vm11, %v782_v3 }
 0x1e5   : > { %v721_v8 = vpop.f32.mrb[11].mxu1  ;;  %2148 = vmatmul.mubr.msk.f32.gmra.mrb[6].mxu0 %vm471_vm11, %v783_v4  ;;  %v785_v10 = vmul.f32 %v2120_v6, %v769_v7  ;;  %v1004_v7 = vld [vmem:[%s2946_s7 + $0x78] sm:$0xff] }
 0x1e6   : > { %v784_v9 = vmul.f32 %v768_v5, %v721_v8  ;;  %v1003_v8 = vld [vmem:[%s2946_s7 + $0x70] sm:$0xff] }
 0x1e8   : > { %v2123_v12 = vpop.f32.mrb[12].mxu1  ;;  %2150 = vmatprep.mubr.msk.f32.mxu0 %vm471_vm11, %v784_v9 }
 0x1e9   : > { %v731_v14 = vpop.f32.mrb[13].mxu1  ;;  %2151 = vmatmul.mubr.msk.f32.gmra.mrb[8].mxu0 %vm471_vm11, %v785_v10  ;;  %v787_v16 = vmul.f32 %v2123_v12, %v771_v13 }
 0x1ea   : > { %v786_v15 = vmul.f32 %v770_v11, %v731_v14 }
 0x1ec   : > { %v2126_v18 = vpop.f32.mrb[14].mxu1  ;;  %2153 = vmatprep.mubr.msk.f32.mxu0 %vm471_vm11, %v786_v15 }
 0x1ed   : > { %v741_v20 = vpop.f32.mrb[15].mxu1  ;;  %2154 = vmatmul.mubr.msk.f32.gmra.mrb[10].mxu0 %vm471_vm11, %v787_v16  ;;  %v789_v22 = vmul.f32 %v2126_v18, %v773_v19 }
 0x1ee   : > { %v788_v21 = vmul.f32 %v772_v17, %v741_v20 }
 0x1f0   : > { %v2129_v24 = vpop.f32.mrb[16].mxu1  ;;  %2156 = vmatprep.mubr.msk.f32.mxu0 %vm471_vm11, %v788_v21 }
 0x1f1   : > { %v751_v26 = vpop.f32.mrb[17].mxu1  ;;  %2157 = vmatmul.mubr.msk.f32.gmra.mrb[12].mxu0 %vm471_vm11, %v789_v22  ;;  %v791_v28 = vmul.f32 %v2129_v24, %v775_v25 }
 0x1f2   : > { %v790_v27 = vmul.f32 %v774_v23, %v751_v26 }
 0x1f4   : > { %2159 = vmatprep.mubr.msk.f32.mxu0 %vm471_vm11, %v790_v27 }
 0x1f5   : > { %2160 = vmatmul.mubr.msk.f32.gmra.mrb[14].mxu0 %vm471_vm11, %v791_v28 }
 0x2ac   : > { %v2140_v31 = vpop.f32.mrb[0].mxu0 }
 0x2ad   : > { %v1006_v32 = vmul.f32 %v2140_v31, %v990_v29  ;;  %v910_v33 = vpop.f32.mrb[1].mxu0 }
 0x2ae   : > { %v1005_v34 = vmul.f32 %v989_v30, %v910_v33 }
 0x2af   : > { %1023 = vst.msk [vmem:[#allocation2 + $0x8] sm:$0xff] %vm1021_vm15, %v1006_v32 }
 0x2b0   : > { %1022 = vst.msk [vmem:[#allocation2] sm:$0xff] %vm1021_vm15, %v1005_v34  ;;  %v2143_v37 = vpop.f32.mrb[2].mxu0 }
 0x2b1   : > { %v1008_v38 = vmul.f32 %v2143_v37, %v992_v35  ;;  %v920_v39 = vpop.f32.mrb[3].mxu0 }
 0x2b2   : > { %v1007_v40 = vmul.f32 %v991_v36, %v920_v39 }
 0x2b3   : > { %1025 = vst.msk [vmem:[#allocation2 + $0x18] sm:$0xff] %vm1021_vm15, %v1008_v38 }
 0x2b4   : > { %1024 = vst.msk [vmem:[#allocation2 + $0x10] sm:$0xff] %vm1021_vm15, %v1007_v40  ;;  %v2146_v43 = vpop.f32.mrb[4].mxu0 }
 0x2b5   : > { %v1010_v44 = vmul.f32 %v2146_v43, %v994_v41  ;;  %v930_v45 = vpop.f32.mrb[5].mxu0 }
 0x2b6   : > { %v1009_v46 = vmul.f32 %v993_v42, %v930_v45 }
 0x2b7   : > { %1027 = vst.msk [vmem:[#allocation2 + $0x28] sm:$0xff] %vm1021_vm15, %v1010_v44 }
 0x2b8   : > { %1026 = vst.msk [vmem:[#allocation2 + $0x20] sm:$0xff] %vm1021_vm15, %v1009_v46  ;;  %v2149_v49 = vpop.f32.mrb[6].mxu0 }
 0x2b9   : > { %v1012_v50 = vmul.f32 %v2149_v49, %v996_v47  ;;  %v940_v51 = vpop.f32.mrb[7].mxu0 }
 0x2ba   : > { %v1011_v52 = vmul.f32 %v995_v48, %v940_v51 }
 0x2bb   : > { %1029 = vst.msk [vmem:[#allocation2 + $0x38] sm:$0xff] %vm1021_vm15, %v1012_v50 }
 0x2bc   : > { %1028 = vst.msk [vmem:[#allocation2 + $0x30] sm:$0xff] %vm1021_vm15, %v1011_v52  ;;  %v2152_v55 = vpop.f32.mrb[8].mxu0 }
 0x2bd   : > { %v1014_v56 = vmul.f32 %v2152_v55, %v998_v53  ;;  %v950_v57 = vpop.f32.mrb[9].mxu0 }
 0x2be   : > { %v1013_v58 = vmul.f32 %v997_v54, %v950_v57 }
 0x2bf   : > { %1031 = vst.msk [vmem:[#allocation2 + $0x48] sm:$0xff] %vm1021_vm15, %v1014_v56 }
 0x2c0   : > { %1030 = vst.msk [vmem:[#allocation2 + $0x40] sm:$0xff] %vm1021_vm15, %v1013_v58  ;;  %v2155_v61 = vpop.f32.mrb[10].mxu0 }
 0x2c1   : > { %v1016_v62 = vmul.f32 %v2155_v61, %v1000_v59  ;;  %v960_v63 = vpop.f32.mrb[11].mxu0 }
 0x2c2   : > { %v1015_v0 = vmul.f32 %v999_v60, %v960_v63 }
 0x2c3   : > { %1033 = vst.msk [vmem:[#allocation2 + $0x58] sm:$0xff] %vm1021_vm15, %v1016_v62 }
 0x2c4   : > { %1032 = vst.msk [vmem:[#allocation2 + $0x50] sm:$0xff] %vm1021_vm15, %v1015_v0  ;;  %v2158_v3 = vpop.f32.mrb[12].mxu0 }
 0x2c5   : > { %v1018_v4 = vmul.f32 %v2158_v3, %v1002_v1  ;;  %v970_v5 = vpop.f32.mrb[13].mxu0 }
 0x2c6   : > { %v1017_v6 = vmul.f32 %v1001_v2, %v970_v5 }
 0x2c7   : > { %1035 = vst.msk [vmem:[#allocation2 + $0x68] sm:$0xff] %vm1021_vm15, %v1018_v4 }
 0x2c8   : > { %1034 = vst.msk [vmem:[#allocation2 + $0x60] sm:$0xff] %vm1021_vm15, %v1017_v6  ;;  %v2161_v9 = vpop.f32.mrb[14].mxu0 }
 0x2c9   : > { %v1020_v10 = vmul.f32 %v2161_v9, %v1004_v7  ;;  %v980_v11 = vpop.f32.mrb[15].mxu0 }
 0x2ca   : > { %v1019_v12 = vmul.f32 %v1003_v8, %v980_v11 }
 0x2cb   : > { %1037 = vst.msk [vmem:[#allocation2 + $0x78] sm:$0xff] %vm1021_vm15, %v1020_v10 }
 0x2cc   : > { %1036 = vst.msk [vmem:[#allocation2 + $0x70] sm:$0xff] %vm1021_vm15, %v1019_v12 }
 0x2cd PF: > { %v1077_v13 = vld [vmem:[#allocation2] sm:$0xff]  ;;  %v1078_v14 = vld [vmem:[#allocation2 + $0x8] sm:$0xff]  ;;  %v1079_v15 = vld [vmem:[#allocation2 + $0x10] sm:$0xff]  ;;  %v2468_v40 = vmov 0.0   ;;  %vm2469_vm0 = vmmov 0   ;;  %v2470_v54 = vmov 0.0|0.0   ;;  %v1168_v55 = vlaneseq }
 0x2ce   : > { %v2284_v16 = vpack.c.bf16 %v1078_v14, %v1077_v13  ;;  %v1080_v17 = vld [vmem:[#allocation2 + $0x18] sm:$0xff]  ;;  %v1081_v19 = vld [vmem:[#allocation2 + $0x20] sm:$0xff]  ;;  %v1082_v20 = vld [vmem:[#allocation2 + $0x28] sm:$0xff]  ;;  %2197 = vmatprep.subr.bf16.mxu1 %v2468_v40  ;;  %2213 = vmatprep.mubr.msk.bf16.mxu1 %vm2469_vm0, %v2468_v40  ;;  %s1971_s24 = sshll.u32 %s2453_s26, 4  ;;  %vm1290_vm2 = vcmask 130048   ;;  %vm1328_vm4 = vcmask 122880  }
 0x2cf   : > { %v2288_v18 = vpack.c.bf16 %v1080_v17, %v1079_v15  ;;  %v2292_v21 = vpack.c.bf16 %v1082_v20, %v1081_v19  ;;  %v1083_v22 = vld [vmem:[#allocation2 + $0x30] sm:$0xff]  ;;  %v1084_v23 = vld [vmem:[#allocation2 + $0x38] sm:$0xff]  ;;  %v1072_v24 = vld [vmem:[%s2571_s16] sm:$0xff]  ;;  %v1169_v56 = vshrl.u32 %v1168_v55, 7  ;;  %v1172_v58 = vstv %s1971_s24  ;;  %p1984_p11 = scmp.ne.s32.totalorder %s2453_s26, 1 }
 0x2d0   : > { %2285 = vmatprep.subr.bf16.mxu0 %v2284_v16  ;;  %2194 = vmatprep.mubr.f32.mxu0 %v1072_v24  ;;  %v1085_v25 = vld [vmem:[#allocation2 + $0x40] sm:$0xff]  ;;  %v1086_v26 = vld [vmem:[#allocation2 + $0x48] sm:$0xff]  ;;  %v2296_v27 = vpack.c.bf16 %v1084_v23, %v1083_v22  ;;  %v1087_v29 = vld [vmem:[#allocation2 + $0x50] sm:$0xff]  ;;  %vm2472_vm5 = vmmov (!%p1984_p11), 0   ;;  %vm1600_vm6 = vcmask (!%p1984_p11), 261120   ;;  %s2474_s24 = smov (!%p1984_p11), 32  }
 0x2d1   : > { %2287 = vmatpush3.bf16.msra.mxu0 %v2284_v16  ;;  %v2300_v28 = vpack.c.bf16 %v1086_v26, %v1085_v25  ;;  %v1088_v30 = vld [vmem:[#allocation2 + $0x58] sm:$0xff]  ;;  %v1089_v32 = vld [vmem:[#allocation2 + $0x60] sm:$0xff]  ;;  %v1090_v33 = vld [vmem:[#allocation2 + $0x68] sm:$0xff]  ;;  %v1170_v57 = vadd.s32 8, %v1169_v56  ;;  %v1173_v61 = vadd.s32 %v1172_v58, %v1169_v56  ;;  %v1307_v12 = vsub.s32 0, %v1169_v56  ;;  %s2476_s13 = smov (!%p1984_p11), 64  }
 0x2d2   : > { %2289 = vmatprep.subr.bf16.mxu0 %v2288_v18  ;;  %v2304_v31 = vpack.c.bf16 %v1088_v30, %v1087_v29  ;;  %v2308_v34 = vpack.c.bf16 %v1090_v33, %v1089_v32  ;;  %v1092_v36 = vld [vmem:[#allocation2 + $0x78] sm:$0xff]  ;;  %v1073_v38 = vld [vmem:[%s2571_s16 + $0x8] sm:$0xff]  ;;  %v2371_v39 = vld [vmem:[%s2948_s9] sm:$0xff]  }
 0x2d3   : > { %v1091_v35 = vld [vmem:[#allocation2 + $0x70] sm:$0xff]  ;;  %2198 = vmatpush3.bf16.msra.mxu1 %v2371_v39  ;;  %v2372_v41 = vld [vmem:[%s2948_s9 + $0x8] sm:$0xff]   ;;  %v2374_v43 = vld [vmem:[%s2948_s9 + $0x18] sm:$0xff]   ;;  %v1174_v59 = vadd.s32 %v1172_v58, %v1170_v57 }
 0x2d4   : > { %v2312_v37 = vpack.c.bf16 %v1092_v36, %v1091_v35  ;;  %2199 = vmatprep.subr.bf16.mxu1 %v2468_v40  ;;  %v2373_v42 = vld [vmem:[%s2948_s9 + $0x10] sm:$0xff]   ;;  %v2375_v44 = vld [vmem:[%s2948_s9 + $0x20] sm:$0xff]   ;;  %v2376_v45 = vld [vmem:[%s2948_s9 + $0x28] sm:$0xff]  }
 0x2d5   : > { %2291 = vmatpush3.bf16.msra.mxu0 %v2288_v18  ;;  %v2377_v46 = vld [vmem:[%s2948_s9 + $0x30] sm:$0xff]   ;;  %v2378_v47 = vld [vmem:[%s2948_s9 + $0x38] sm:$0xff]   ;;  %v1330_v48 = vld [vmem:[%s2949_s10] sm:$0xff] }
 0x2d6   : > { %2293 = vmatprep.subr.bf16.mxu0 %v2292_v21  ;;  %v1331_v49 = vld [vmem:[%s2949_s10 + $0x8] sm:$0xff]  ;;  %v1074_v50 = vld [vmem:[%s2576_s19] sm:$0xff] }
 0x2d7   : > { %2200 = vmatpush3.bf16.msra.mxu1 %v2372_v41  ;;  %v2316_v51 = vpack.c.bf16 %v1331_v49, %v1330_v48  ;;  %v1075_v52 = vld [vmem:[%s2576_s19 + $0x8] sm:$0xff]  ;;  %v1972_v60 = vld [vmem:[#allocation3] ss:$0 sm:$0xff]  ;;  %v1289_v10 = vld [vmem:[#allocation4] sm:$0x1]  ;;  %s2475_s19 = smov (!%p1984_p11), 96  }
 0x2d8   : > { %2201 = vmatprep.subr.bf16.mxu1 %v2468_v40  ;;  %v1076_v53 = vpack.c.bf16 %v1075_v52, %v1074_v50  ;;  %vm1181_vm1 = vcmp.lt.s32.totalorder %v1174_v59, %v1972_v60  ;;  %vm1180_vm3 = vcmp.lt.s32.totalorder %v1173_v61, %v1972_v60  ;;  %v1506_v56 = vld [vmem:[%s2949_s10] sm:$0xff] (!%p1984_p11)  ;;  %v1507_v57 = vld [vmem:[%s2949_s10 + $0x8] sm:$0xff] (!%p1984_p11)  ;;  %v2471_v59 = vmov (!%p1984_p11), 0.0|0.0  }
 0x2d9   : > { %2295 = vmatpush3.bf16.msra.mxu0 %v2292_v21  ;;  %v2385_v58 = vld [vmem:[%s2950_s11] sm:$0xff] (!%p1984_p11)   ;;  %v2324_v60 = vpack.c.bf16 (!%p1984_p11), %v1507_v57, %v1506_v56  ;;  %v2473_v61 = vmov (!%p1984_p11), 0.0  }
 0x2da   : > { %2297 = vmatprep.subr.bf16.mxu0 %v2296_v27 }
 0x2db   : > { %2202 = vmatpush3.bf16.msra.mxu1 %v2373_v42 }
 0x2dc   : > { %2203 = vmatprep.subr.bf16.mxu1 %v2468_v40 }
 0x2dd   : > { %2299 = vmatpush3.bf16.msra.mxu0 %v2296_v27 }
 0x2de   : > { %2301 = vmatprep.subr.bf16.mxu0 %v2300_v28 }
 0x2df   : > { %2204 = vmatpush3.bf16.msra.mxu1 %v2374_v43 }
 0x2e0   : > { %2205 = vmatprep.subr.bf16.mxu1 %v2468_v40 }
 0x2e1   : > { %2303 = vmatpush3.bf16.msra.mxu0 %v2300_v28 }
 0x2e2   : > { %2305 = vmatprep.subr.bf16.mxu0 %v2304_v31 }
 0x2e3   : > { %2206 = vmatpush3.bf16.msra.mxu1 %v2375_v44 }
 0x2e4   : > { %2207 = vmatprep.subr.bf16.mxu1 %v2468_v40 }
 0x2e5   : > { %2307 = vmatpush3.bf16.msra.mxu0 %v2304_v31  ;;  %v1316_v31 = vld [vmem:[#allocation5] sm:$0x1] }
 0x2e6   : > { %2309 = vmatprep.subr.bf16.mxu0 %v2308_v34 }
 0x2e7   : > { %2208 = vmatpush3.bf16.msra.mxu1 %v2376_v45 }
 0x2e8   : > { %2209 = vmatprep.subr.bf16.mxu1 %v2468_v40 }
 0x2e9   : > { %2311 = vmatpush3.bf16.msra.mxu0 %v2308_v34 }
 0x2ea   : > { %2313 = vmatprep.subr.bf16.mxu0 %v2312_v37 }
 0x2eb   : > { %2210 = vmatpush3.bf16.msra.mxu1 %v2377_v46 }
 0x2ec   : > { %2211 = vmatprep.subr.bf16.mxu1 %v2468_v40 }
 0x2ed   : > { %2315 = vmatpush3.bf16.msra.mxu0 %v2312_v37 }
 0x2ee   : > { %2317 = vmatprep.subr.bf16.mxu0 %v2316_v51 }
 0x2ef   : > { %2212 = vmatpush3.bf16.msra.mxu1 %v2378_v47 }
 0x2f0   : > { %2195 = vmatmul.mubr.f32.vlgmr.msra.gmra.mrb[0].mxu0 %v1073_v38  ;;  %2238 = vmatprep.subr.bf16.mxu1 (!%p1984_p11), %v2473_v61 }
 0x2f1   : > { %2319 = vmatpush3.bf16.msra.mxu0 %v2316_v51 }
 0x2f2   : > { %2214 = vmatmul.mubr.bf16.vlgmr.msra.gmra.mrb[0].mxu1 %v1076_v53  ;;  %2320 = vmatprep.subr.bf16.mxu0 %v2470_v54 }
 0x2f3   : > { %2242 = vmatprep.mubr.msk.bf16.mxu1 (!%p1984_p11), %vm2472_vm5, %v2473_v61  ;;  %2239 = vmatpush3.bf16.msra.mxu1 (!%p1984_p11), %v2385_v58 }
 0x2f4   : > { %2240 = vmatprep.subr.bf16.mxu1 (!%p1984_p11), %v2473_v61 }
 0x3c3   : > { %v2196_v62 = vpop.f32.mrb[0].mxu0 }
 0x3c4   : > { %v1183_v63 = vsel %vm1181_vm1, %v2196_v62, -1e+30  ;;  %v1159_v0 = vpop.f32.mrb[1].mxu0 }
 0x3c5   : > { %v1292_v1 = vsel %vm1290_vm2, %v1183_v63, -inf  ;;  %v1182_v2 = vsel %vm1180_vm3, %v1159_v0, -1e+30  ;;  %v1282_v36 = vpop.f32.mrb[0].mxu1  ;;  %v2386_v0 = vld [vmem:[%s2950_s11 + $0x8] sm:$0xff] (!%p1984_p11)  }
 0x3c6   : > { %v1291_v3 = vsel %vm1290_vm2, %v1182_v2, -inf  ;;  %v2215_v37 = vpop.f32.mrb[1].mxu1  ;;  %2241 = vmatpush3.bf16.msra.mxu1 (!%p1984_p11), %v2386_v0 }
 0x3c7   : > { %v1293_v4 = vmax.f32 %v1291_v3, %v1292_v1  ;;  %v1285_v38 = vpop.f32.mrb[2].mxu1  ;;  %2254 = vmatprep.subr.bf16.mxu1 (!%p1984_p11), %v2473_v61  ;;  %v2387_v1 = vld [vmem:[%s2950_s11] sm:$0xff] (!%p1984_p11)  }
 0x3c8   : > { %v2216_v39 = vpop.f32.mrb[3].mxu1 }
 0x3c9   : > { %v1294_v5 = vrot.slane %v1293_v4, 4 }
 0x3cb   : > { %v1295_v6 = vmax.f32 %v1293_v4, %v1294_v5 }
 0x3cd   : > { %v1296_v7 = vrot.slane %v1295_v6, 2 }
 0x3cf   : > { %v1297_v8 = vmax.f32 %v1295_v6, %v1296_v7 }
 0x3d1   : > { %v1298_v9 = vrot.slane %v1297_v8, 1 }
 0x3d3   : > { %v1299_v11 = vmax.f32 %v1297_v8, %v1298_v9  ;;  %v2389_v8 = vld [vmem:[%s2950_s11] sm:$0xff] (!%p1984_p11)   ;;  %v2391_v9 = vld [vmem:[%s2950_s11 + $0x8] sm:$0xff] (!%p1984_p11)  }
 0x3d5   : > { %v1300_v13 = vmax.f32 %v1289_v10, %v1299_v11 }
 0x3d7   : > { %v1308_v14 = vrot.slane %v1300_v13, %v1307_v12  ;;  %1499 = vst.msk [vmem:[#allocation4] sm:$0x1] %vm1328_vm4, %v1300_v13  ;;  %v1301_v17 = vsub.f32 %v1289_v10, %v1300_v13  ;;  %v2390_v10 = vld [vmem:[%s2950_s11] sm:$0xff] (!%p1984_p11)   ;;  %v2392_v12 = vld [vmem:[%s2950_s11 + $0x8] sm:$0xff] (!%p1984_p11)  }
 0x3d9   : > { %v1310_v15 = vsub.f32 %v1182_v2, %v1308_v14  ;;  %v1311_v16 = vsub.f32 %v1183_v63, %v1308_v14  ;;  %v1302_v20 = vmul.f32 1.442695, %v1301_v17  ;;  %v2388_v2 = vld [vmem:[%s2950_s11 + $0x8] sm:$0xff] (!%p1984_p11)  }
 0x3db   : > { %v1312_v18 = vmul.f32 1.442695, %v1310_v15  ;;  %v1314_v19 = vmul.f32 1.442695, %v1311_v16 }
 0x3dd   : > { %2379 = vpow2.f32 %v1312_v18 }
 0x3de   : > { %2381 = vpow2.f32 %v1314_v19 }
 0x3df   : > { %2383 = vpow2.f32 %v1302_v20 }
 0x3e7   : > { %v2380_v21 = vpop.eup %2379 }
 0x3e8   : > { %v2382_v22 = vpop.eup %2381  ;;  %v1318_v23 = vsel %vm1290_vm2, %v2380_v21, 0.0  ;;  %2221 = vmatprep.mubr.msk.f32.mxu0 %vm1290_vm2, %v2380_v21 }
 0x3e9   : > { %v1319_v24 = vsel %vm1290_vm2, %v2382_v22, 0.0  ;;  %2222 = vmatmul.mubr.msk.f32.vlgmr.msra.gmra.mrb[2].mxu0 %vm1290_vm2, %v2382_v22  ;;  %v2384_v26 = vpop.eup %2383 }
 0x3ea   : > { %v1320_v25 = vadd.f32 %v1319_v24, %v1318_v23  ;;  %2322 = vmatpush3.bf16.msra.mxu0 %v2316_v51  ;;  %2228 = vmatprep.mubr.msk.f32.mxu0 %vm2469_vm0, %v2468_v40  ;;  %v1317_v33 = vmul.f32 %v2384_v26, %v1316_v31  ;;  %v1486_v51 = vld [vmem:[#allocation6] sm:$0x1] }
 0x3eb   : > { %2323 = vmatprep.subr.bf16.mxu0 (!%p1984_p11), %v2471_v59 }
 0x3ec   : > { %v1321_v27 = vrot.slane %v1320_v25, 4 }
 0x3ed   : > { %2229 = vmatmul.mubr.msk.f32.vlgmr.msra.gmra.mrb[4].mxu0 %vm1290_vm2, %v2384_v26 }
 0x3ee   : > { %v1322_v28 = vadd.f32 %v1321_v27, %v1320_v25  ;;  %2235 = vmatprep.mubr.msk.f32.mxu0 (!%p1984_p11), %vm2472_vm5, %v2473_v61  ;;  %2325 = vmatpush3.bf16.msra.mxu0 (!%p1984_p11), %v2324_v60 }
 0x3ef   : > { %2246 = vmatprep.subr.bf16.mxu0 (!%p1984_p11), %v2473_v61 }
 0x3f0   : > { %v1323_v29 = vrot.slane %v1322_v28, 2 }
 0x3f2   : > { %v1324_v30 = vadd.f32 %v1323_v29, %v1322_v28 }
 0x3f4   : > { %v1325_v32 = vrot.slane %v1324_v30, 1 }
 0x3f6   : > { %v1326_v34 = vadd.f32 %v1325_v32, %v1324_v30 }
 0x3f8   : > { %v1327_v35 = vadd.f32 %v1326_v34, %v1317_v33 }
 0x3fa   : > { %1329 = vst.msk [vmem:[#allocation5] sm:$0x1] %vm1328_vm4, %v1327_v35 }
 0x401   : > { %v1504_v62 = vld [vmem:[#allocation5] sm:$0x1] (!%p1984_p11) }
 0x402   : > { %2393 = vrcp.f32 (!%p1984_p11), %v1504_v62 }
 0x40c   : > { %v2394_v63 = vpop.eup (!%p1984_p11), %2393 }
 0x40d   : > { %2236 = vmatmul.mubr.msk.f32.vlgmr.msra.gmra.mrb[0].mxu0 (!%p1984_p11), %vm1290_vm2, %v2394_v63 }
 0x40e   : > { %2250 = vmatprep.mubr.msk.bf16.mxu0 (!%p1984_p11), %vm2472_vm5, %v2473_v61  ;;  %2247 = vmatpush3.bf16.msra.mxu0 (!%p1984_p11), %v2387_v1 }
 0x40f   : > { %2248 = vmatprep.subr.bf16.mxu0 (!%p1984_p11), %v2473_v61 }
 0x412   : > { %2249 = vmatpush3.bf16.msra.mxu0 (!%p1984_p11), %v2388_v2 }
 0x413   : > { %2262 = vmatprep.subr.bf16.mxu0 (!%p1984_p11), %v2473_v61 }
 0x4bc   : > { %v2223_v41 = vpop.f32.mrb[2].mxu0 }
 0x4bd   : > { %v1489_v40 = vmul.f32 %v2223_v41, %v1285_v38  ;;  %v1404_v42 = vpop.f32.mrb[3].mxu0 }
 0x4be   : > { %v1488_v43 = vmul.f32 %v1404_v42, %v1282_v36 }
 0x4c0   : > { %v1490_v44 = vadd.f32 %v1489_v40, %v1488_v43  ;;  %v1482_v45 = vpop.f32.mrb[4].mxu0 }
 0x4c1   : > { %v2230_v46 = vpop.f32.mrb[5].mxu0  ;;  %v1487_v53 = vmul.f32 %v1486_v51, %v1482_v45 }
 0x4c2   : > { %v1491_v47 = vrot.slane %v1490_v44, 4 }
 0x4c4   : > { %v1492_v48 = vadd.f32 %v1491_v47, %v1490_v44 }
 0x4c6   : > { %v1493_v49 = vrot.slane %v1492_v48, 2 }
 0x4c8   : > { %v1494_v50 = vadd.f32 %v1493_v49, %v1492_v48 }
 0x4ca   : > { %v1495_v52 = vrot.slane %v1494_v50, 1  ;;  %1503 = sbr.rel (%p1984_p11) target bundleno = 1591 (0x637), region = 72 }
 0x4cc   : > { %v1496_v54 = vadd.f32 %v1495_v52, %v1494_v50 }
 0x4ce   : > { %v1497_v55 = vadd.f32 %v1496_v54, %v1487_v53 }
 0x4d0   : > { %1498 = vst [vmem:[#allocation6] sm:$0x1] %v1497_v55 }
 0x4d7   : > { %v1581_v3 = vld [vmem:[#allocation6] sm:$0x1] }
 0x4e0   : > { %v1577_v4 = vpop.f32.mrb[0].mxu0 }
 0x4e1   : > { %v1582_v5 = vmul.f32 %v1581_v3, %v1577_v4  ;;  %v2237_v6 = vpop.f32.mrb[1].mxu0 }
 0x4e3   : > { %v1583_v7 = vpack.c.bf16 %v1582_v5, %v1582_v5 }
 0x4e5   : > { %1774 = vrot.lane.b32.xlu1 %v1583_v7, %s2474_s24  ;;  %1650 = vrot.lane.b32.xlu0 %v1583_v7, %s2475_s19 }
 0x4e6   : > { %2243 = vmatmul.mubr.msk.bf16.vlgmr.msra.gmra.mrb[0].mxu1 %vm1600_vm6, %v1583_v7 }
 0x4e7   : > { %2255 = vmatpush3.bf16.msra.mxu1 %v2389_v8  ;;  %2258 = vmatprep.mubr.msk.bf16.mxu1 %vm2472_vm5, %v2473_v61 }
 0x4e8   : > { %2256 = vmatprep.subr.bf16.mxu1 %v2473_v61 }
 0x4e9   : > { %1712 = vrot.lane.b32.xlu0 %v1583_v7, %s2476_s13 }
 0x4eb   : > { %2257 = vmatpush3.bf16.msra.mxu1 %v2391_v9 }
 0x557   : > { %v1651_v11 = vpop.permute.xlu0 %1650  ;;  %v1775_v14 = vpop.permute.xlu1 %1774 }
 0x558   : > { %2251 = vmatmul.mubr.msk.bf16.vlgmr.msra.gmra.mrb[4].mxu0 %vm1600_vm6, %v1651_v11 }
 0x559   : > { %2263 = vmatpush3.bf16.msra.mxu0 %v2390_v10  ;;  %2266 = vmatprep.mubr.msk.bf16.mxu0 %vm2472_vm5, %v2473_v61 }
 0x55a   : > { %2264 = vmatprep.subr.bf16.mxu0 %v2473_v61 }
 0x55b   : > { %v1713_v13 = vpop.permute.xlu0 %1712 }
 0x55c   : > { %2259 = vmatmul.mubr.msk.bf16.vlgmr.msra.gmra.mrb[4].mxu1 %vm1600_vm6, %v1713_v13 }
 0x55d   : > { %2265 = vmatpush3.bf16.msra.mxu0 %v2392_v12 }
 0x560   : > { %2267 = vmatmul.mubr.msk.bf16.vlgmr.msra.gmra.mrb[8].mxu0 %vm1600_vm6, %v1775_v14 }
 0x5b9   : > { %v1638_v15 = vpop.f32.mrb[0].mxu1 }
 0x5ba   : > { %1644 = vst [vmem:[#allocation9] sm:$0x1] %v1638_v15  ;;  %v2244_v16 = vpop.f32.mrb[1].mxu1 }
 0x5bb   : > { %v1641_v17 = vpop.f32.mrb[2].mxu1 }
 0x5bc   : > { %v2245_v18 = vpop.f32.mrb[3].mxu1 }
 0x62b   : > { %v1701_v19 = vpop.f32.mrb[4].mxu0 }
 0x62c   : > { %1707 = vst [vmem:[#allocation9 + $0x1] sm:$0x1] %v1701_v19  ;;  %v2252_v20 = vpop.f32.mrb[5].mxu0 }
 0x62d   : > { %v1704_v21 = vpop.f32.mrb[6].mxu0 }
 0x62e   : > { %v2253_v22 = vpop.f32.mrb[7].mxu0 }
 0x62f   : > { %v1763_v23 = vpop.f32.mrb[4].mxu1 }
 0x630   : > { %1769 = vst [vmem:[#allocation9 + $0x2] sm:$0x1] %v1763_v23  ;;  %v2260_v24 = vpop.f32.mrb[5].mxu1 }
 0x631   : > { %v1766_v25 = vpop.f32.mrb[6].mxu1 }
 0x632   : > { %v2261_v26 = vpop.f32.mrb[7].mxu1 }
 0x633   : > { %v1825_v27 = vpop.f32.mrb[8].mxu0 }
 0x634   : > { %1831 = vst [vmem:[#allocation9 + $0x3] sm:$0x1] %v1825_v27  ;;  %v2268_v28 = vpop.f32.mrb[9].mxu0 }
 0x635   : > { %v1828_v29 = vpop.f32.mrb[10].mxu0 }
 0x636   : > { %v2269_v30 = vpop.f32.mrb[11].mxu0 }
 0x637 PF: > { %p2904_p12 = scmp.eq.s32.totalorder %s1924_s0, 1  ;;  %s2477_s20 = smov [#allocation9]  }
 0x638   : > { %s1841_s21 = sshll.u32 %s2477_s20, 4  ;;  %s1842_s21 = int_to_ptr.vmem [resolvable:$true] %s1841_s21 }
 0x639   : > { %s2407_s22 = scalar_lea.vmem %s1842_s21, 64  ;;  %p2414_p2 = scmp.lt.s32.totalorder %s1842_s21, %s1842_s21 }
 0x63a   : > { %p2408_p13 = scmp.ne.s32.totalorder %s1842_s21, %s2407_s22  ;;  %p2415_p3 = scmp.lt.s32.totalorder %s2407_s22, %s2407_s22 }
 0x63c   : > { %p2409_p0 = pnand %p2408_p13, %p2904_p12  ;;  %p2416_p4 = por %p2415_p3, %p2414_p2 }
 0x63e   : > { %p2410_p1 = pneg %p2409_p0 }
 0x640   : > { %p2417_p5 = pnand %p2416_p4, %p2410_p1 }
 0x642   : > { %2420 = shalt.err (!%p2417_p5)
}
 0x643   : > { %s2421_s0 = scalar_lea.hbm %s2951_s12, 64 }
 0x644   : > { %p2422_p6 = scmp.ne.s32.totalorder %s2951_s12, %s2421_s0  ;;  %p2427_p9 = scmp.lt.u32.totalorder %s2421_s0, %s2951_s12 }
 0x646   : > { %p2423_p7 = pnand %p2422_p6, %p2904_p12 }
 0x648   : > { %p2424_p8 = pneg %p2423_p7 }
 0x64a   : > { %p2429_p10 = pnand %p2427_p9, %p2424_p8 }
 0x64c   : > { %2432 = shalt.err (!%p2429_p10)
}
 0x64d   : > { %2327 = dma.vmem_to_hbm [thread:$0]  (%p2904_p12), %s1842_s21, 64, %s2951_s12, [#allocation10]  }
 0x64e   : > { %2448 = dma.done.wait (%p2904_p12), [#allocation10], 64  }
 0x64f   : > { %2450 = vsyncadd (%p2904_p12), [#allocation10], 4294967232 }
 0x650 PF: > { %s29_s28 = sadd.s32 1, %s2461_s28   ;;  %s2953_s26 = smov %s2457_s27 }
 0x651   : > { %p26_p11 = scmp.ge.s32.totalorder %s29_s28, 4   ;;  %s2954_s27 = smov %s2956_s29 }
 0x653   :  { %28 = sbr.rel (!%p26_p11) target bundleno = 17 (0x11), region = 106 }
 0x65a   :  { %1854 = vsyncpa [#allocation10], 1 }
 0x65b   :  { %1856 = vsyncpa [#allocation10 + $0x1], 1 }

</bundles_post_ra>
